<compile_context>
chip_gen: v7x
topology: tpu7x:2x2x1
jax: 0.10.0
libtpu: 0.0.40
codegen_flags: <defaults>
</compile_context>

<pallas_src>
import jax
import jax.numpy as jnp
from jax.experimental import pallas as pl
from jax.experimental.pallas import tpu as pltpu


def _rtgb_kernel(x_ref, wct_ref, bc_ref, wwt_ref, bw_ref, wht_ref, bh_ref,
                 ew_ref, ewt_ref, eh_ref, eht_ref, out_ref):
    # x_ref   : (Bt, C, W*H)   input tile in source dtype (lane-dense)
    # wct_ref : (C, C) = Wc^T     bc_ref : (1, C)
    # wwt_ref : (W, W) = Ww^T     bw_ref : (1, W)
    # wht_ref : (H, H) = Wh^T     bh_ref : (1, H)
    # ew_ref  : (W, W*H) 0/1 expansion   ewt_ref : (W*H, W) 0/1 reduction
    # eh_ref  : (H, W*H) 0/1 expansion   eht_ref : (W*H, H) 0/1 reduction
    # out_ref : (Bt, C, W*H)   output tile in source dtype (lane-dense)
    C = x_ref.shape[1]
    WH = x_ref.shape[2]
    W = ew_ref.shape[0]
    H = eh_ref.shape[0]
    hi = jax.lax.Precision.HIGHEST

    x3 = x_ref[...].astype(jnp.float32)                      # (Bt, C, WH)

    # --- pooled statistics (all lane-dense) ---------------------------------
    p_c = jnp.sum(x3, axis=2) * (1.0 / WH)                    # (Bt, C)  mean over (w,h)
    s_wh = jnp.sum(x3, axis=1)                                # (Bt, WH) summed over channels
    # reduce flattened (w,h) lane axis over h / over w via tiny 0/1 matmuls
    p_w = jnp.dot(s_wh, ewt_ref[...], precision=hi,
                  preferred_element_type=jnp.float32) * (1.0 / (C * H))   # (Bt, W)
    p_h = jnp.dot(s_wh, eht_ref[...], precision=hi,
                  preferred_element_type=jnp.float32) * (1.0 / (C * W))   # (Bt, H)

    # --- 1x1-conv + sigmoid gates (exp/logistic on the EUP) -----------------
    c1 = jax.nn.sigmoid(jnp.dot(p_c, wct_ref[...], precision=hi,
                                preferred_element_type=jnp.float32) + bc_ref[...])  # (Bt, C)
    w1 = jax.nn.sigmoid(jnp.dot(p_w, wwt_ref[...], precision=hi,
                                preferred_element_type=jnp.float32) + bw_ref[...])  # (Bt, W)
    h1 = jax.nn.sigmoid(jnp.dot(p_h, wht_ref[...], precision=hi,
                                preferred_element_type=jnp.float32) + bh_ref[...])  # (Bt, H)

    # --- rank-1 assembly, kept lane-dense -----------------------------------
    # wh_flat[b, w*H + h] = w1[b, w] * h1[b, h]
    wh_flat = (jnp.dot(w1, ew_ref[...], precision=hi, preferred_element_type=jnp.float32)
               * jnp.dot(h1, eh_ref[...], precision=hi, preferred_element_type=jnp.float32))
    out_ref[...] = (c1[:, :, None] * wh_flat[:, None, :]).astype(out_ref.dtype)


def _choose_bt(batch, per_image_bytes, target_bytes=1 << 20, min_steps=8):
    """Largest divisor of `batch` whose block is <= target, keeping >=min_steps steps."""
    bt = max(1, min(batch, target_bytes // max(per_image_bytes, 1)))
    if batch >= min_steps:
        bt = min(bt, max(1, batch // min_steps))
    for cand in range(int(bt), 0, -1):
        if batch % cand == 0:
            return cand
    return 1


def rtgb_forward(params, x):
    """RTGB forward. x: (B, channel, width, height) -> same shape, same dtype."""
    B, C, W, H = x.shape
    WH = W * H
    x_flat = x.reshape(B, C, WH)          # free view of contiguous NCHW memory

    f32 = jnp.float32
    wct = params["wc"].T.astype(f32)              # (C, C)   1x1-conv weight, transposed
    bc = params["bc"].reshape(1, C).astype(f32)
    wwt = params["ww"].T.astype(f32)              # (W, W)
    bw = params["bw"].reshape(1, W).astype(f32)
    wht = params["wh"].T.astype(f32)              # (H, H)
    bh = params["bh"].reshape(1, H).astype(f32)

    # 0/1 reduction / expansion matrices between the flattened (w*H + h) lane
    # axis and the separate w / h axes.
    w_of = jnp.arange(WH, dtype=jnp.int32) // H
    h_of = jnp.arange(WH, dtype=jnp.int32) % H
    ew = (jnp.arange(W, dtype=jnp.int32)[:, None] == w_of[None, :]).astype(f32)   # (W, WH)
    eh = (jnp.arange(H, dtype=jnp.int32)[:, None] == h_of[None, :]).astype(f32)   # (H, WH)
    ewt = ew.T                                                                     # (WH, W)
    eht = eh.T                                                                     # (WH, H)

    itemsize = x.dtype.itemsize
    per_image_bytes = C * WH * itemsize
    bt = _choose_bt(B, per_image_bytes)
    grid = (B // bt,)

    block_in = bt * per_image_bytes
    block_out = bt * C * WH * itemsize
    param_bytes = sum(int(a.size) * 4 for a in (wct, bc, wwt, bw, wht, bh, ew, ewt, eh, eht))
    # 2x for double-buffering of in/out blocks, params counted twice for slack.
    vmem_limit = int(min(max(2 * (block_in + block_out) + 2 * param_bytes + (2 << 20),
                             8 << 20), 64 << 20))

    grid_spec = pltpu.PrefetchScalarGridSpec(
        num_scalar_prefetch=0,
        grid=grid,
        in_specs=[
            pl.BlockSpec((bt, C, WH), lambda b: (b, 0, 0)),
            pl.BlockSpec((C, C), lambda b: (0, 0)),
            pl.BlockSpec((1, C), lambda b: (0, 0)),
            pl.BlockSpec((W, W), lambda b: (0, 0)),
            pl.BlockSpec((1, W), lambda b: (0, 0)),
            pl.BlockSpec((H, H), lambda b: (0, 0)),
            pl.BlockSpec((1, H), lambda b: (0, 0)),
            pl.BlockSpec((W, WH), lambda b: (0, 0)),
            pl.BlockSpec((WH, W), lambda b: (0, 0)),
            pl.BlockSpec((H, WH), lambda b: (0, 0)),
            pl.BlockSpec((WH, H), lambda b: (0, 0)),
        ],
        out_specs=pl.BlockSpec((bt, C, WH), lambda b: (b, 0, 0)),
    )

    out_flat = pl.pallas_call(
        _rtgb_kernel,
        out_shape=jax.ShapeDtypeStruct((B, C, WH), x.dtype),
        grid_spec=grid_spec,
        compiler_params=pltpu.CompilerParams(
            dimension_semantics=("parallel",),      # batch shards over v7x's 2 TCs
            vmem_limit_bytes=vmem_limit),
    )(x_flat, wct, bc, wwt, bw, wht, bh, ew, ewt, eh, eht)
    return out_flat.reshape(B, C, W, H)


def rtgb_reference(params, x):
    """Pure-JAX reference of the PyTorch forward (all batch items computed)."""
    hi = jax.lax.Precision.HIGHEST
    xf = x.astype(jnp.float32)
    pc = jnp.mean(xf, axis=(2, 3))                 # (B, C)  pool over (w, h)
    pw = jnp.mean(xf, axis=(1, 3))                 # (B, W)  pool over (c, h)
    ph = jnp.mean(xf, axis=(1, 2))                 # (B, H)  pool over (c, w)
    c1 = jax.nn.sigmoid(jnp.dot(pc, params["wc"].T, precision=hi) + params["bc"])
    w1 = jax.nn.sigmoid(jnp.dot(pw, params["ww"].T, precision=hi) + params["bw"])
    h1 = jax.nn.sigmoid(jnp.dot(ph, params["wh"].T, precision=hi) + params["bh"])
    return jnp.einsum("bc,bw,bh->bcwh", c1, w1, h1, precision=hi)


if __name__ == "__main__":
    B, C, W, H = 2, 4, 16, 16

    keys = jax.random.split(jax.random.PRNGKey(0), 7)
    params = {
        # 1x1 conv weights squeezed to (out, in); biases as flat vectors.
        "wc": 0.5 * jax.random.normal(keys[0], (C, C), jnp.float32),
        "bc": 0.1 * jax.random.normal(keys[1], (C,), jnp.float32),
        "ww": 0.5 * jax.random.normal(keys[2], (W, W), jnp.float32),
        "bw": 0.1 * jax.random.normal(keys[3], (W,), jnp.float32),
        "wh": 0.5 * jax.random.normal(keys[4], (H, H), jnp.float32),
        "bh": 0.1 * jax.random.normal(keys[5], (H,), jnp.float32),
    }
    x = jax.random.normal(keys[6], (B, C, W, H), jnp.float32)

    out = jax.block_until_ready(rtgb_forward(params, x))
    assert out.shape == (B, C, W, H)
    assert out.dtype == x.dtype

    ref = rtgb_reference(params, x)
    err = float(jnp.max(jnp.abs(out.astype(jnp.float32) - ref)))
    assert err < 1e-4, f"max abs err = {err}"
    print("KERNEL_OK")
</pallas_src>

<mosaic_0001>
module attributes {stable_mosaic.version = 11 : i64} {
  func.func @_rtgb_kernel(%arg0: i32, %arg1: memref<2x4x256xf32, #tpu.memory_space<vmem>>, %arg2: memref<4x4xf32, #tpu.memory_space<vmem>>, %arg3: memref<1x4xf32, #tpu.memory_space<vmem>>, %arg4: memref<16x16xf32, #tpu.memory_space<vmem>>, %arg5: memref<1x16xf32, #tpu.memory_space<vmem>>, %arg6: memref<16x16xf32, #tpu.memory_space<vmem>>, %arg7: memref<1x16xf32, #tpu.memory_space<vmem>>, %arg8: memref<16x256xf32, #tpu.memory_space<vmem>>, %arg9: memref<256x16xf32, #tpu.memory_space<vmem>>, %arg10: memref<16x256xf32, #tpu.memory_space<vmem>>, %arg11: memref<256x16xf32, #tpu.memory_space<vmem>>, %arg12: memref<2x4x256xf32, #tpu.memory_space<vmem>>) attributes {dimension_semantics = [#tpu.dimension_semantics<parallel>], iteration_bounds = array<i64: 1>, scalar_prefetch = 0 : i64, scratch_operands = 0 : i64, tpu.core_type = #tpu.core_type<tc>, window_params = [{transform_indices = @transform_0, window_bounds = array<i64: 2, 4, 256>}, {pipeline_mode = #tpu.pipeline_mode<synchronous>, transform_indices = @transform_1, window_bounds = array<i64: 4, 4>}, {pipeline_mode = #tpu.pipeline_mode<synchronous>, transform_indices = @transform_2, window_bounds = array<i64: 1, 4>}, {pipeline_mode = #tpu.pipeline_mode<synchronous>, transform_indices = @transform_3, window_bounds = array<i64: 16, 16>}, {pipeline_mode = #tpu.pipeline_mode<synchronous>, transform_indices = @transform_4, window_bounds = array<i64: 1, 16>}, {pipeline_mode = #tpu.pipeline_mode<synchronous>, transform_indices = @transform_5, window_bounds = array<i64: 16, 16>}, {pipeline_mode = #tpu.pipeline_mode<synchronous>, transform_indices = @transform_6, window_bounds = array<i64: 1, 16>}, {pipeline_mode = #tpu.pipeline_mode<synchronous>, transform_indices = @transform_7, window_bounds = array<i64: 16, 256>}, {pipeline_mode = #tpu.pipeline_mode<synchronous>, transform_indices = @transform_8, window_bounds = array<i64: 256, 16>}, {pipeline_mode = #tpu.pipeline_mode<synchronous>, transform_indices = @transform_9, window_bounds = array<i64: 16, 256>}, {pipeline_mode = #tpu.pipeline_mode<synchronous>, transform_indices = @transform_10, window_bounds = array<i64: 256, 16>}, {transform_indices = @transform_11, window_bounds = array<i64: 2, 4, 256>}]} {
    %c0 = arith.constant 0 : index
    %c0_0 = arith.constant 0 : index
    %c0_1 = arith.constant 0 : index
    %0 = vector.load %arg1[%c0, %c0_0, %c0_1] : memref<2x4x256xf32, #tpu.memory_space<vmem>>, vector<2x4x256xf32>
    %cst = arith.constant dense<0.000000e+00> : vector<2x4xf32>
    %1 = vector.multi_reduction <add>, %0, %cst [2] : vector<2x4x256xf32> to vector<2x4xf32>
    %cst_2 = arith.constant 3.906250e-03 : f32
    %2 = vector.broadcast %cst_2 : f32 to vector<2x4xf32>
    %3 = arith.mulf %1, %2 : vector<2x4xf32>
    %cst_3 = arith.constant dense<0.000000e+00> : vector<2x256xf32>
    %4 = vector.multi_reduction <add>, %0, %cst_3 [1] : vector<2x4x256xf32> to vector<2x256xf32>
    %c0_4 = arith.constant 0 : index
    %c0_5 = arith.constant 0 : index
    %5 = vector.load %arg9[%c0_4, %c0_5] : memref<256x16xf32, #tpu.memory_space<vmem>>, vector<256x16xf32>
    %cst_6 = arith.constant dense<0.000000e+00> : vector<2x16xf32>
    %6 = tpu.matmul %4, %5, %cst_6 {dimension_numbers = #tpu.dot_dimension_numbers<[1], [0], [0], [1], [0, 0, 1, 1], [], []>, precision = #tpu.contract_precision<fp32>} : vector<2x256xf32>, vector<256x16xf32>, vector<2x16xf32> -> vector<2x16xf32>
    %cst_7 = arith.constant 1.562500e-02 : f32
    %7 = vector.broadcast %cst_7 : f32 to vector<2x16xf32>
    %8 = arith.mulf %6, %7 : vector<2x16xf32>
    %c0_8 = arith.constant 0 : index
    %c0_9 = arith.constant 0 : index
    %9 = vector.load %arg11[%c0_8, %c0_9] : memref<256x16xf32, #tpu.memory_space<vmem>>, vector<256x16xf32>
    %cst_10 = arith.constant dense<0.000000e+00> : vector<2x16xf32>
    %10 = tpu.matmul %4, %9, %cst_10 {dimension_numbers = #tpu.dot_dimension_numbers<[1], [0], [0], [1], [0, 0, 1, 1], [], []>, precision = #tpu.contract_precision<fp32>} : vector<2x256xf32>, vector<256x16xf32>, vector<2x16xf32> -> vector<2x16xf32>
    %cst_11 = arith.constant 1.562500e-02 : f32
    %11 = vector.broadcast %cst_11 : f32 to vector<2x16xf32>
    %12 = arith.mulf %10, %11 : vector<2x16xf32>
    %c0_12 = arith.constant 0 : index
    %c0_13 = arith.constant 0 : index
    %13 = vector.load %arg2[%c0_12, %c0_13] : memref<4x4xf32, #tpu.memory_space<vmem>>, vector<4x4xf32>
    %cst_14 = arith.constant dense<0.000000e+00> : vector<2x4xf32>
    %14 = tpu.matmul %3, %13, %cst_14 {dimension_numbers = #tpu.dot_dimension_numbers<[1], [0], [0], [1], [0, 0, 1, 1], [], []>, precision = #tpu.contract_precision<fp32>} : vector<2x4xf32>, vector<4x4xf32>, vector<2x4xf32> -> vector<2x4xf32>
    %c0_15 = arith.constant 0 : index
    %c0_16 = arith.constant 0 : index
    %15 = vector.load %arg3[%c0_15, %c0_16] : memref<1x4xf32, #tpu.memory_space<vmem>>, vector<1x4xf32>
    %16 = vector.broadcast %15 : vector<1x4xf32> to vector<2x4xf32>
    %17 = arith.addf %14, %16 : vector<2x4xf32>
    %18 = arith.negf %17 : vector<2x4xf32>
    %19 = math.exp %18 : vector<2x4xf32>
    %cst_17 = arith.constant 1.000000e+00 : f32
    %20 = vector.broadcast %cst_17 : f32 to vector<2x4xf32>
    %21 = arith.addf %20, %19 : vector<2x4xf32>
    %22 = arith.divf %20, %21 : vector<2x4xf32>
    %c0_18 = arith.constant 0 : index
    %c0_19 = arith.constant 0 : index
    %23 = vector.load %arg4[%c0_18, %c0_19] : memref<16x16xf32, #tpu.memory_space<vmem>>, vector<16x16xf32>
    %cst_20 = arith.constant dense<0.000000e+00> : vector<2x16xf32>
    %24 = tpu.matmul %8, %23, %cst_20 {dimension_numbers = #tpu.dot_dimension_numbers<[1], [0], [0], [1], [0, 0, 1, 1], [], []>, precision = #tpu.contract_precision<fp32>} : vector<2x16xf32>, vector<16x16xf32>, vector<2x16xf32> -> vector<2x16xf32>
    %c0_21 = arith.constant 0 : index
    %c0_22 = arith.constant 0 : index
    %25 = vector.load %arg5[%c0_21, %c0_22] : memref<1x16xf32, #tpu.memory_space<vmem>>, vector<1x16xf32>
    %26 = vector.broadcast %25 : vector<1x16xf32> to vector<2x16xf32>
    %27 = arith.addf %24, %26 : vector<2x16xf32>
    %28 = arith.negf %27 : vector<2x16xf32>
    %29 = math.exp %28 : vector<2x16xf32>
    %cst_23 = arith.constant 1.000000e+00 : f32
    %30 = vector.broadcast %cst_23 : f32 to vector<2x16xf32>
    %31 = arith.addf %30, %29 : vector<2x16xf32>
    %32 = arith.divf %30, %31 : vector<2x16xf32>
    %c0_24 = arith.constant 0 : index
    %c0_25 = arith.constant 0 : index
    %33 = vector.load %arg6[%c0_24, %c0_25] : memref<16x16xf32, #tpu.memory_space<vmem>>, vector<16x16xf32>
    %cst_26 = arith.constant dense<0.000000e+00> : vector<2x16xf32>
    %34 = tpu.matmul %12, %33, %cst_26 {dimension_numbers = #tpu.dot_dimension_numbers<[1], [0], [0], [1], [0, 0, 1, 1], [], []>, precision = #tpu.contract_precision<fp32>} : vector<2x16xf32>, vector<16x16xf32>, vector<2x16xf32> -> vector<2x16xf32>
    %c0_27 = arith.constant 0 : index
    %c0_28 = arith.constant 0 : index
    %35 = vector.load %arg7[%c0_27, %c0_28] : memref<1x16xf32, #tpu.memory_space<vmem>>, vector<1x16xf32>
    %36 = vector.broadcast %35 : vector<1x16xf32> to vector<2x16xf32>
    %37 = arith.addf %34, %36 : vector<2x16xf32>
    %38 = arith.negf %37 : vector<2x16xf32>
    %39 = math.exp %38 : vector<2x16xf32>
    %cst_29 = arith.constant 1.000000e+00 : f32
    %40 = vector.broadcast %cst_29 : f32 to vector<2x16xf32>
    %41 = arith.addf %40, %39 : vector<2x16xf32>
    %42 = arith.divf %40, %41 : vector<2x16xf32>
    %c0_30 = arith.constant 0 : index
    %c0_31 = arith.constant 0 : index
    %43 = vector.load %arg8[%c0_30, %c0_31] : memref<16x256xf32, #tpu.memory_space<vmem>>, vector<16x256xf32>
    %cst_32 = arith.constant dense<0.000000e+00> : vector<2x256xf32>
    %44 = tpu.matmul %32, %43, %cst_32 {dimension_numbers = #tpu.dot_dimension_numbers<[1], [0], [0], [1], [0, 0, 1, 1], [], []>, precision = #tpu.contract_precision<fp32>} : vector<2x16xf32>, vector<16x256xf32>, vector<2x256xf32> -> vector<2x256xf32>
    %c0_33 = arith.constant 0 : index
    %c0_34 = arith.constant 0 : index
    %45 = vector.load %arg10[%c0_33, %c0_34] : memref<16x256xf32, #tpu.memory_space<vmem>>, vector<16x256xf32>
    %cst_35 = arith.constant dense<0.000000e+00> : vector<2x256xf32>
    %46 = tpu.matmul %42, %45, %cst_35 {dimension_numbers = #tpu.dot_dimension_numbers<[1], [0], [0], [1], [0, 0, 1, 1], [], []>, precision = #tpu.contract_precision<fp32>} : vector<2x16xf32>, vector<16x256xf32>, vector<2x256xf32> -> vector<2x256xf32>
    %47 = arith.mulf %44, %46 : vector<2x256xf32>
    %48 = vector.shape_cast %22 : vector<2x4xf32> to vector<2x4x1xf32>
    %49 = vector.shape_cast %47 : vector<2x256xf32> to vector<2x1x256xf32>
    %50 = vector.broadcast %48 : vector<2x4x1xf32> to vector<2x4x256xf32>
    %51 = vector.broadcast %49 : vector<2x1x256xf32> to vector<2x4x256xf32>
    %52 = arith.mulf %50, %51 : vector<2x4x256xf32>
    %c0_36 = arith.constant 0 : index
    %c0_37 = arith.constant 0 : index
    %c0_38 = arith.constant 0 : index
    %53 = vector.load %arg12[%c0_36, %c0_37, %c0_38] : memref<2x4x256xf32, #tpu.memory_space<vmem>>, vector<2x4x256xf32>
    tpu.vector_store %arg12[%c0_36, %c0_37, %c0_38], %52 {strides = array<i32>} : memref<2x4x256xf32, #tpu.memory_space<vmem>>, vector<2x4x256xf32>,
    return
  }
  func.func @transform_0(%arg0: i32) -> (i32, i32, i32) {
    %c0_i32 = arith.constant 0 : i32
    %c0_i32_0 = arith.constant 0 : i32
    %c0_i32_1 = arith.constant 0 : i32
    return %arg0, %c0_i32, %c0_i32_0 : i32, i32, i32
  }
  func.func @transform_1(%arg0: i32) -> (i32, i32) {
    %c0_i32 = arith.constant 0 : i32
    %c0_i32_0 = arith.constant 0 : i32
    %c0_i32_1 = arith.constant 0 : i32
    return %c0_i32, %c0_i32_0 : i32, i32
  }
  func.func @transform_2(%arg0: i32) -> (i32, i32) {
    %c0_i32 = arith.constant 0 : i32
    %c0_i32_0 = arith.constant 0 : i32
    %c0_i32_1 = arith.constant 0 : i32
    return %c0_i32, %c0_i32_0 : i32, i32
  }
  func.func @transform_3(%arg0: i32) -> (i32, i32) {
    %c0_i32 = arith.constant 0 : i32
    %c0_i32_0 = arith.constant 0 : i32
    %c0_i32_1 = arith.constant 0 : i32
    return %c0_i32, %c0_i32_0 : i32, i32
  }
  func.func @transform_4(%arg0: i32) -> (i32, i32) {
    %c0_i32 = arith.constant 0 : i32
    %c0_i32_0 = arith.constant 0 : i32
    %c0_i32_1 = arith.constant 0 : i32
    return %c0_i32, %c0_i32_0 : i32, i32
  }
  func.func @transform_5(%arg0: i32) -> (i32, i32) {
    %c0_i32 = arith.constant 0 : i32
    %c0_i32_0 = arith.constant 0 : i32
    %c0_i32_1 = arith.constant 0 : i32
    return %c0_i32, %c0_i32_0 : i32, i32
  }
  func.func @transform_6(%arg0: i32) -> (i32, i32) {
    %c0_i32 = arith.constant 0 : i32
    %c0_i32_0 = arith.constant 0 : i32
    %c0_i32_1 = arith.constant 0 : i32
    return %c0_i32, %c0_i32_0 : i32, i32
  }
  func.func @transform_7(%arg0: i32) -> (i32, i32) {
    %c0_i32 = arith.constant 0 : i32
    %c0_i32_0 = arith.constant 0 : i32
    %c0_i32_1 = arith.constant 0 : i32
    return %c0_i32, %c0_i32_0 : i32, i32
  }
  func.func @transform_8(%arg0: i32) -> (i32, i32) {
    %c0_i32 = arith.constant 0 : i32
    %c0_i32_0 = arith.constant 0 : i32
    %c0_i32_1 = arith.constant 0 : i32
    return %c0_i32, %c0_i32_0 : i32, i32
  }
  func.func @transform_9(%arg0: i32) -> (i32, i32) {
    %c0_i32 = arith.constant 0 : i32
    %c0_i32_0 = arith.constant 0 : i32
    %c0_i32_1 = arith.constant 0 : i32
    return %c0_i32, %c0_i32_0 : i32, i32
  }
  func.func @transform_10(%arg0: i32) -> (i32, i32) {
    %c0_i32 = arith.constant 0 : i32
    %c0_i32_0 = arith.constant 0 : i32
    %c0_i32_1 = arith.constant 0 : i32
    return %c0_i32, %c0_i32_0 : i32, i32
  }
  func.func @transform_11(%arg0: i32) -> (i32, i32, i32) {
    %c0_i32 = arith.constant 0 : i32
    %c0_i32_0 = arith.constant 0 : i32
    %c0_i32_1 = arith.constant 0 : i32
    return %arg0, %c0_i32, %c0_i32_0 : i32, i32, i32
  }
}

</mosaic_0001>

<bundles_post_ra>
// kernel: tpu_custom_call.1
= control target key start
LH: loop header
LB: loop body
LE: loop exit
PB: predicated region body
PF: predicated region fallthrough
CT: control target
= control target key end

     0   :  { %s7264_s0 = inlined_call_operand.vmem [shape: f32[2,4,256], index: 0, kind: input, shape index: {}]   ;;  %s7265_s1 = inlined_call_operand.vmem [shape: f32[4,4], index: 1, kind: input, shape index: {}]   ;;  %s7266_s2 = inlined_call_operand.vmem [shape: f32[1,4], index: 2, kind: input, shape index: {}]   ;;  %s7267_s3 = inlined_call_operand.vmem [shape: f32[16,16], index: 3, kind: input, shape index: {}]   ;;  %s7268_s4 = inlined_call_operand.vmem [shape: f32[1,16], index: 4, kind: input, shape index: {}]   ;;  %s7269_s5 = inlined_call_operand.vmem [shape: f32[16,16], index: 5, kind: input, shape index: {}]   ;;  %s7270_s6 = inlined_call_operand.vmem [shape: f32[1,16], index: 6, kind: input, shape index: {}]   ;;  %s7271_s7 = inlined_call_operand.vmem [shape: f32[16,256], index: 7, kind: input, shape index: {}]   ;;  %s7272_s8 = inlined_call_operand.vmem [shape: f32[256,16], index: 8, kind: input, shape index: {}]   ;;  %s7273_s9 = inlined_call_operand.vmem [shape: f32[16,256], index: 9, kind: input, shape index: {}]   ;;  %s7274_s10 = inlined_call_operand.vmem [shape: f32[256,16], index: 10, kind: input, shape index: {}]   ;;  %s7275_s11 = inlined_call_operand.hbm [shape: f32[2,4,256], index: 11, kind: output, shape index: {}]  }
   0x1   :  { %v100_v0 = vld [vmem:[%s7272_s8 + $0x80] sm:$0xff]  ;;  %v101_v1 = vld [vmem:[%s7272_s8 + $0x88] sm:$0xff]  ;;  %v102_v7 = vld [vmem:[%s7272_s8 + $0x90] sm:$0xff] }
   0x2   :  { %v84_v2 = vld [vmem:[%s7272_s8] sm:$0xff]  ;;  %v174_v3 = vand.u32 4294901760, %v100_v0  ;;  %v177_v4 = vand.u32 4294901760, %v101_v1  ;;  %v85_v5 = vld [vmem:[%s7272_s8 + $0x8] sm:$0xff]  ;;  %v103_v8 = vld [vmem:[%s7272_s8 + $0x98] sm:$0xff]  ;;  %v180_v10 = vand.u32 4294901760, %v102_v7 }
   0x3   :  { %v126_v6 = vand.u32 4294901760, %v84_v2  ;;  %v129_v9 = vand.u32 4294901760, %v85_v5  ;;  %v183_v11 = vand.u32 4294901760, %v103_v8  ;;  %v86_v12 = vld [vmem:[%s7272_s8 + $0x10] sm:$0xff]  ;;  %v87_v13 = vld [vmem:[%s7272_s8 + $0x18] sm:$0xff]  ;;  %v104_v18 = vld [vmem:[%s7272_s8 + $0xa0] sm:$0xff] }
   0x4   :  { %v5648_v14 = vpack.c.bf16 %v177_v4, %v174_v3  ;;  %v132_v16 = vand.u32 4294901760, %v86_v12  ;;  %v135_v17 = vand.u32 4294901760, %v87_v13  ;;  %v105_v19 = vld [vmem:[%s7272_s8 + $0xa8] sm:$0xff]  ;;  %v88_v23 = vld [vmem:[%s7272_s8 + $0x20] sm:$0xff]  ;;  %v5671_v25 = vsub.f32 %v102_v7, %v180_v10  ;;  %v106_v36 = vld [vmem:[%s7272_s8 + $0xb0] sm:$0xff] }
   0x5   :  { %v5650_v15 = vsub.f32 %v84_v2, %v126_v6  ;;  %v5658_v20 = vpack.c.bf16 %v129_v9, %v126_v6  ;;  %v5660_v21 = vsub.f32 %v85_v5, %v129_v9  ;;  %v5662_v22 = vpack.c.bf16 %v183_v11, %v180_v10  ;;  %v89_v24 = vld [vmem:[%s7272_s8 + $0x28] sm:$0xff]  ;;  %v107_v41 = vld [vmem:[%s7272_s8 + $0xb8] sm:$0xff]  ;;  %v90_v54 = vld [vmem:[%s7272_s8 + $0x30] sm:$0xff] }
   0x6   :  { %4993 = vmatprep.subr.bf16.mxu0 %v5648_v14  ;;  %v5673_v26 = vsub.f32 %v103_v8, %v183_v11  ;;  %v5675_v27 = vpack.c.bf16 %v135_v17, %v132_v16  ;;  %v186_v28 = vand.u32 4294901760, %v104_v18  ;;  %v189_v29 = vand.u32 4294901760, %v105_v19  ;;  %v91_v55 = vld [vmem:[%s7272_s8 + $0x38] sm:$0xff]  ;;  %v109_v5 = vld [vmem:[%s7272_s8 + $0xc8] sm:$0xff]  ;;  %v92_v10 = vld [vmem:[%s7272_s8 + $0x40] sm:$0xff] }
   0x7   :  { %4995 = vmatpush3.bf16.msra.mxu0 %v5658_v20  ;;  %v5678_v30 = vsub.f32 %v100_v0, %v174_v3  ;;  %v5680_v31 = vsub.f32 %v101_v1, %v177_v4  ;;  %v138_v32 = vand.u32 4294901760, %v88_v23  ;;  %v141_v33 = vand.u32 4294901760, %v89_v24  ;;  %v108_v4 = vld [vmem:[%s7272_s8 + $0xc0] sm:$0xff] }
   0x8   :  { %4997 = vmatprep.subr.bf16.mxu0 %v5662_v22  ;;  %v7293_v34 = vand.u32 4294901760, %v5650_v15  ;;  %v7291_v35 = vand.u32 4294901760, %v5660_v21  ;;  %v5688_v37 = vsub.f32 %v86_v12, %v132_v16  ;;  %v5690_v38 = vsub.f32 %v87_v13, %v135_v17 }
   0x9   :  { %v5692_v39 = vpack.c.bf16 %v189_v29, %v186_v28  ;;  %v7295_v40 = vand.u32 4294901760, %v5678_v30  ;;  %v5698_v42 = vsub.f32 %v104_v18, %v186_v28  ;;  %v5700_v43 = vsub.f32 %v105_v19, %v189_v29 }
   0xa   :  { %v7294_v44 = vand.u32 4294901760, %v5680_v31  ;;  %v5703_v45 = vpack.c.bf16 %v141_v33, %v138_v32  ;;  %v241_v47 = vsub.f32 %v5650_v15, %v7293_v34  ;;  %v248_v48 = vsub.f32 %v5660_v21, %v7291_v35 }
   0xb   :  { %4999 = vmatpush3.bf16.msra.mxu0 %v5675_v27  ;;  %v353_v46 = vsub.f32 %v5678_v30, %v7295_v40  ;;  %v192_v49 = vand.u32 4294901760, %v106_v36  ;;  %v195_v51 = vand.u32 4294901760, %v107_v41  ;;  %v7289_v52 = vand.u32 4294901760, %v5671_v25 }
   0xc   :  { %7380 = vst [vmem:[#allocation5_spill] sm:$0xff] %v5703_v45  ;;  %5001 = vmatprep.subr.bf16.mxu0 %v5692_v39  ;;  %v360_v50 = vsub.f32 %v5680_v31, %v7294_v44  ;;  %v7288_v53 = vand.u32 4294901760, %v5673_v26  ;;  %v5727_v57 = vsub.f32 %v88_v23, %v138_v32  ;;  %v242_v58 = vand.u32 4294901760, %v241_v47 }
   0xd   :  { %v354_v56 = vand.u32 4294901760, %v353_v46  ;;  %v249_v59 = vand.u32 4294901760, %v248_v48  ;;  %v5729_v61 = vsub.f32 %v89_v24, %v141_v33  ;;  %v5731_v62 = vpack.c.bf16 %v195_v51, %v192_v49  ;;  %v93_v24 = vld [vmem:[%s7272_s8 + $0x48] sm:$0xff] }
   0xe   :  { %v361_v60 = vand.u32 4294901760, %v360_v50  ;;  %v367_v63 = vsub.f32 %v5671_v25, %v7289_v52  ;;  %v374_v1 = vsub.f32 %v5673_v26, %v7288_v53  ;;  %v144_v2 = vand.u32 4294901760, %v90_v54 }
   0xf   :  { %7381 = vst [vmem:[#allocation6_spill] sm:$0xff] %v5731_v62  ;;  %5003 = vmatpush3.bf16.msra.mxu0 %v5703_v45  ;;  %v5026_v0 = vpack.c.bf16 %v249_v59, %v242_v58  ;;  %v147_v3 = vand.u32 4294901760, %v91_v55  ;;  %v7285_v8 = vand.u32 4294901760, %v5688_v37  ;;  %v7283_v9 = vand.u32 4294901760, %v5690_v38 }
  0x10   :  { %v5024_v6 = vpack.c.bf16 %v361_v60, %v354_v56  ;;  %5005 = vmatprep.subr.bf16.mxu0 %v5731_v62  ;;  %v368_v7 = vand.u32 4294901760, %v367_v63  ;;  %v5752_v11 = vsub.f32 %v106_v36, %v192_v49  ;;  %v5754_v12 = vsub.f32 %v107_v41, %v195_v51 }
  0x11   :  { %v375_v13 = vand.u32 4294901760, %v374_v1  ;;  %v5756_v16 = vpack.c.bf16 %v147_v3, %v144_v2  ;;  %v255_v17 = vsub.f32 %v5688_v37, %v7285_v8  ;;  %v262_v18 = vsub.f32 %v5690_v38, %v7283_v9 }
  0x12   :  { %5025 = vmatprep.subr.bf16.mxu1 %v5024_v6  ;;  %v198_v19 = vand.u32 4294901760, %v108_v4  ;;  %v201_v23 = vand.u32 4294901760, %v109_v5 }
  0x13   :  { %7382 = vst [vmem:[#allocation7_spill] sm:$0xff] %v5756_v16 }
  0x14   :  { %16 = vsyncpa [#allocation3], 0  ;;  %5027 = vmatpush3.bf16.msra.mxu1 %v5026_v0  ;;  %v5028_v28 = vpack.c.bf16 %v375_v13, %v368_v7  ;;  %5007 = vmatpush3.bf16.msra.mxu0 %v5756_v16  ;;  %v7282_v29 = vand.u32 4294901760, %v5698_v42  ;;  %v7280_v32 = vand.u32 4294901760, %v5700_v43  ;;  %v150_v33 = vand.u32 4294901760, %v92_v10  ;;  %v111_v56 = vld [vmem:[%s7272_s8 + $0xd8] sm:$0xff] }
  0x15   :  { %v5770_v36 = vsub.f32 %v90_v54, %v144_v2  ;;  %v256_v41 = vand.u32 4294901760, %v255_v17  ;;  %v263_v46 = vand.u32 4294901760, %v262_v18  ;;  %v5772_v47 = vpack.c.bf16 %v201_v23, %v198_v19  ;;  %v110_v54 = vld [vmem:[%s7272_s8 + $0xd0] sm:$0xff] }
  0x16   :  { %5029 = vmatprep.subr.bf16.mxu1 %v5028_v28  ;;  %v5774_v48 = vsub.f32 %v91_v55, %v147_v3  ;;  %v381_v49 = vsub.f32 %v5698_v42, %v7282_v29  ;;  %v388_v50 = vsub.f32 %v5700_v43, %v7280_v32  ;;  %v153_v51 = vand.u32 4294901760, %v93_v24  ;;  %v94_v63 = vld [vmem:[%s7272_s8 + $0x50] sm:$0xff] }
  0x17   :  { %7383 = vst [vmem:[#allocation8_spill] sm:$0xff] %v5772_v47  ;;  %v5030_v58 = vpack.c.bf16 %v263_v46, %v256_v41  ;;  %5009 = vmatprep.subr.bf16.mxu0 %v5772_v47  ;;  %v5789_v55 = vsub.f32 %v108_v4, %v198_v19  ;;  %v7279_v59 = vand.u32 4294901760, %v5727_v57  ;;  %v7278_v60 = vand.u32 4294901760, %v5729_v61 }
  0x18   :  { %v5796_v0 = vsub.f32 %v109_v5, %v201_v23  ;;  %v382_v1 = vand.u32 4294901760, %v381_v49  ;;  %v389_v2 = vand.u32 4294901760, %v388_v50  ;;  %v5798_v3 = vpack.c.bf16 %v153_v51, %v150_v33  ;;  %v95_v5 = vld [vmem:[%s7272_s8 + $0x58] sm:$0xff] }
  0x19   :  { %5031 = vmatpush3.bf16.msra.mxu1 %v5030_v58  ;;  %v269_v4 = vsub.f32 %v5727_v57, %v7279_v59  ;;  %v276_v6 = vsub.f32 %v5729_v61, %v7278_v60  ;;  %v204_v7 = vand.u32 4294901760, %v110_v54  ;;  %v207_v13 = vand.u32 4294901760, %v111_v56 }
  0x1a   :  { %7384 = vst [vmem:[#allocation9_spill] sm:$0xff] %v5798_v3  ;;  %v5032_v17 = vpack.c.bf16 %v389_v2, %v382_v1  ;;  %5011 = vmatpush3.bf16.msra.mxu0 %v5798_v3  ;;  %v7277_v18 = vand.u32 4294901760, %v5752_v11  ;;  %v7276_v19 = vand.u32 4294901760, %v5754_v12  ;;  %v156_v23 = vand.u32 4294901760, %v94_v63 }
  0x1b   :  { %v5812_v28 = vsub.f32 %v92_v10, %v150_v33  ;;  %v270_v41 = vand.u32 4294901760, %v269_v4  ;;  %v277_v46 = vand.u32 4294901760, %v276_v6  ;;  %v5814_v49 = vpack.c.bf16 %v207_v13, %v204_v7  ;;  %v112_v10 = vld [vmem:[%s7272_s8 + $0xe0] sm:$0xff]  ;;  %v113_v33 = vld [vmem:[%s7272_s8 + $0xe8] sm:$0xff] }
  0x1c   :  { %5033 = vmatprep.subr.bf16.mxu1 %v5032_v17  ;;  %v5816_v50 = vsub.f32 %v93_v24, %v153_v51  ;;  %v395_v58 = vsub.f32 %v5752_v11, %v7277_v18  ;;  %v402_v1 = vsub.f32 %v5754_v12, %v7276_v19  ;;  %v159_v2 = vand.u32 4294901760, %v95_v5  ;;  %v96_v17 = vld [vmem:[%s7272_s8 + $0x60] sm:$0xff] }
  0x1d   :  { %7385 = vst [vmem:[#allocation10_spill] sm:$0xff] %v5814_v49  ;;  %v5034_v4 = vpack.c.bf16 %v277_v46, %v270_v41  ;;  %5013 = vmatprep.subr.bf16.mxu0 %v5814_v49  ;;  %v5831_v24 = vsub.f32 %v110_v54, %v204_v7  ;;  %v7281_v51 = vand.u32 4294901760, %v5770_v36  ;;  %v7284_v6 = vand.u32 4294901760, %v5774_v48 }
  0x1e   :  { %v5838_v19 = vsub.f32 %v111_v56, %v207_v13  ;;  %v396_v18 = vand.u32 4294901760, %v395_v58  ;;  %v403_v60 = vand.u32 4294901760, %v402_v1  ;;  %v5840_v59 = vpack.c.bf16 %v159_v2, %v156_v23  ;;  %v97_v56 = vld [vmem:[%s7272_s8 + $0x68] sm:$0xff] }
  0x1f   :  { %5035 = vmatpush3.bf16.msra.mxu1 %v5034_v4  ;;  %v283_v54 = vsub.f32 %v5770_v36, %v7281_v51  ;;  %v290_v7 = vsub.f32 %v5774_v48, %v7284_v6  ;;  %v210_v41 = vand.u32 4294901760, %v112_v10  ;;  %v213_v46 = vand.u32 4294901760, %v113_v33 }
  0x20   :  { %7386 = vst [vmem:[#allocation11_spill] sm:$0xff] %v5840_v59  ;;  %v5036_v13 = vpack.c.bf16 %v403_v60, %v396_v18  ;;  %5015 = vmatpush3.bf16.msra.mxu0 %v5840_v59  ;;  %v7287_v58 = vand.u32 4294901760, %v5789_v55  ;;  %v7286_v1 = vand.u32 4294901760, %v5796_v0  ;;  %v162_v4 = vand.u32 4294901760, %v96_v17 }
  0x21   :  { %v5854_v32 = vsub.f32 %v94_v63, %v156_v23  ;;  %v284_v51 = vand.u32 4294901760, %v283_v54  ;;  %v291_v29 = vand.u32 4294901760, %v290_v7  ;;  %v5856_v9 = vpack.c.bf16 %v213_v46, %v210_v41  ;;  %v114_v63 = vld [vmem:[%s7272_s8 + $0xf0] sm:$0xff]  ;;  %v115_v23 = vld [vmem:[%s7272_s8 + $0xf8] sm:$0xff] }
  0x22   :  { %5037 = vmatprep.subr.bf16.mxu1 %v5036_v13  ;;  %v5858_v6 = vsub.f32 %v95_v5, %v159_v2  ;;  %v409_v60 = vsub.f32 %v5789_v55, %v7287_v58  ;;  %v416_v18 = vsub.f32 %v5796_v0, %v7286_v1  ;;  %v165_v8 = vand.u32 4294901760, %v97_v56  ;;  %v5880_v13 = vld [vmem:[%s7272_s8 + $0x70] sm:$0xff] }
  0x23   :  { %7387 = vst [vmem:[#allocation12_spill] sm:$0xff] %v5856_v9  ;;  %vm47_vm0 = vcmask 1043456   ;;  %v5038_v5 = vpack.c.bf16 %v291_v29, %v284_v51  ;;  %5017 = vmatprep.subr.bf16.mxu0 %v5856_v9  ;;  %v5873_v2 = vsub.f32 %v112_v10, %v210_v41  ;;  %v7290_v54 = vand.u32 4294901760, %v5812_v28 }
  0x24   :  { %v7292_v7 = vand.u32 4294901760, %v5816_v50  ;;  %v5882_v1 = vsub.f32 %v113_v33, %v213_v46  ;;  %v410_v58 = vand.u32 4294901760, %v409_v60  ;;  %v417_v53 = vand.u32 4294901760, %v416_v18  ;;  %v5895_v33 = vld [vmem:[%s7272_s8 + $0x78] sm:$0xff] }
  0x25   :  { %v5884_v52 = vpack.c.bf16 %v165_v8, %v162_v4  ;;  %5039 = vmatpush3.bf16.msra.mxu1 %v5038_v5  ;;  %v297_v29 = vsub.f32 %v5812_v28, %v7290_v54  ;;  %v216_v51 = vand.u32 4294901760, %v114_v63  ;;  %v219_v41 = vand.u32 4294901760, %v115_v23 }
  0x26   :  { %v304_v10 = vsub.f32 %v5816_v50, %v7292_v7  ;;  %v5040_v46 = vpack.c.bf16 %v417_v53, %v410_v58  ;;  %v7297_v60 = vand.u32 4294901760, %v5831_v24  ;;  %v7296_v18 = vand.u32 4294901760, %v5838_v19 }
  0x27   :  { %7388 = vst [vmem:[#allocation13_spill] sm:$0xff] %v5884_v52  ;;  %5019 = vmatpush3.bf16.msra.mxu0 %v5884_v52  ;;  %v168_v5 = vand.u32 4294901760, %v5880_v13  ;;  %v5901_v54 = vsub.f32 %v96_v17, %v162_v4  ;;  %v298_v35 = vand.u32 4294901760, %v297_v29  ;;  %v5903_v34 = vpack.c.bf16 %v219_v41, %v216_v51  ;;  %v39_v17 = vld [vmem:[%s7264_s0] sm:$0xff]  ;;  %v40_v4 = vld [vmem:[%s7264_s0 + $0x8] sm:$0xff] }
  0x28   :  { %v305_v7 = vand.u32 4294901760, %v304_v10  ;;  %5041 = vmatprep.subr.bf16.mxu1 %v5040_v46  ;;  %v5905_v44 = vsub.f32 %v97_v56, %v165_v8  ;;  %v423_v53 = vsub.f32 %v5831_v24, %v7297_v60  ;;  %v430_v58 = vsub.f32 %v5838_v19, %v7296_v18 }
  0x29   :  { %7389 = vst [vmem:[#allocation14_spill] sm:$0xff] %v5903_v34  ;;  %v171_v40 = vand.u32 4294901760, %v5895_v33  ;;  %5021 = vmatprep.subr.bf16.mxu0 %v5903_v34  ;;  %v5921_v56 = vsub.f32 %v114_v63, %v216_v51  ;;  %v7302_v29 = vand.u32 4294901760, %v5854_v32  ;;  %v7305_v10 = vand.u32 4294901760, %v5858_v6 }
  0x2a   :  { %v5042_v8 = vpack.c.bf16 %v305_v7, %v298_v35  ;;  %v5925_v46 = vsub.f32 %v115_v23, %v219_v41  ;;  %v424_v18 = vand.u32 4294901760, %v423_v53  ;;  %v431_v60 = vand.u32 4294901760, %v430_v58 }
  0x2b   :  { %7390 = vst [vmem:[#allocation15_spill] sm:$0xff] %v5921_v56  ;;  %v5927_v52 = vpack.c.bf16 %v171_v40, %v168_v5  ;;  %v311_v9 = vsub.f32 %v5854_v32, %v7302_v29  ;;  %v318_v35 = vsub.f32 %v5858_v6, %v7305_v10  ;;  %v43_v63 = vcombine.high %v39_v17, %v39_v17 }
  0x2c   :  { %7391 = vst [vmem:[#allocation16_spill] sm:$0xff] %v5925_v46  ;;  %5043 = vmatpush3.bf16.msra.mxu1 %v5042_v8  ;;  %v44_v7 = vcombine.high %v40_v4, %v40_v4  ;;  %v5044_v51 = vpack.c.bf16 %v431_v60, %v424_v18  ;;  %v7310_v23 = vand.u32 4294901760, %v5873_v2  ;;  %v7313_v41 = vand.u32 4294901760, %v5882_v1 }
  0x2d   :  { %7392 = vst [vmem:[#allocation17_spill] sm:$0xff] %v5927_v52  ;;  %5023 = vmatpush3.bf16.msra.mxu0 %v5927_v52  ;;  %v5056_v53 = vpack.c.bf16 %v5680_v31, %v5678_v30  ;;  %v312_v58 = vand.u32 4294901760, %v311_v9  ;;  %v319_v8 = vand.u32 4294901760, %v318_v35  ;;  %v5941_v29 = vsel %vm47_vm0, %v43_v63, 0.0 }
  0x2e   :  { %7393 = vst [vmem:[#allocation18_spill] sm:$0xff] %v5941_v29  ;;  %v5944_v34 = vsel %vm47_vm0, %v44_v7, 0.0  ;;  %5045 = vmatprep.subr.bf16.mxu1 %v5044_v51  ;;  %v66_v60 = vrot.slane %v5941_v29, 4  ;;  %v437_v10 = vsub.f32 %v5873_v2, %v7310_v23  ;;  %v444_v9 = vsub.f32 %v5882_v1, %v7313_v41 }
  0x2f   :  { %7394 = vst [vmem:[#allocation19_spill] sm:$0xff] %v5944_v34  ;;  %v78_v18 = vrot.slane %v5944_v34, 4  ;;  %5057 = vmatprep.subr.bf16.mxu0 %v5056_v53  ;;  %v5046_v35 = vpack.c.bf16 %v319_v8, %v312_v58  ;;  %vm120_vm1 = vcmask 1041409   ;;  %v5955_v63 = vsel %vm47_vm0, %v39_v17, 0.0 }
  0x30   :  { %7395 = vst [vmem:[#allocation20_spill] sm:$0xff] %v5955_v63  ;;  %v5958_v7 = vsel %vm47_vm0, %v40_v4, 0.0  ;;  %v7318_v51 = vand.u32 4294901760, %v5901_v54  ;;  %v67_v52 = vadd.f32 %v66_v60, %v5941_v29  ;;  %v438_v23 = vand.u32 4294901760, %v437_v10 }
  0x31   :  { %7396 = vst [vmem:[#allocation21_spill] sm:$0xff] %v5958_v7  ;;  %v79_v59 = vadd.f32 %v78_v18, %v5944_v34  ;;  %v445_v49 = vand.u32 4294901760, %v444_v9  ;;  %5047 = vmatpush3.bf16.msra.mxu1 %v5046_v35  ;;  %v60_v41 = vrot.slane %v5955_v63, 4  ;;  %v72_v53 = vrot.slane %v5958_v7, 4 }
  0x32   :  { %v325_v17 = vsub.f32 %v5901_v54, %v7318_v51  ;;  %v7321_v4 = vand.u32 4294901760, %v5905_v44  ;;  %v5970_v58 = vsub.f32 %v5880_v13, %v168_v5  ;;  %v68_v8 = vrot.slane %v67_v52, 2 }
  0x33   :  { %v80_v60 = vrot.slane %v79_v59, 2  ;;  %v5048_v29 = vpack.c.bf16 %v445_v49, %v438_v23  ;;  %v61_v10 = vadd.f32 %v60_v41, %v5955_v63  ;;  %v73_v18 = vadd.f32 %v72_v53, %v5958_v7 }
  0x34   :  { %v326_v9 = vand.u32 4294901760, %v325_v17  ;;  %v332_v35 = vsub.f32 %v5905_v44, %v7321_v4  ;;  %v69_v34 = vadd.f32 %v68_v8, %v67_v52  ;;  %v450_v51 = vand.u32 4294901760, %v5921_v56 }
  0x35   :  { %v81_v3 = vadd.f32 %v80_v60, %v79_v59  ;;  %5049 = vmatprep.subr.bf16.mxu1 %v5048_v29  ;;  %v457_v13 = vand.u32 4294901760, %v5925_v46  ;;  %v5980_v5 = vsub.f32 %v5895_v33, %v171_v40  ;;  %v62_v49 = vrot.slane %v61_v10, 2 }
  0x36   :  { %v74_v23 = vrot.slane %v73_v18, 2  ;;  %v333_v41 = vand.u32 4294901760, %v332_v35  ;;  %v70_v63 = vrot.slane %v69_v34, 1  ;;  %v451_v17 = vsub.f32 %v5921_v56, %v450_v51 }
  0x37   :  { %v82_v53 = vrot.slane %v81_v3, 1  ;;  %v458_v7 = vsub.f32 %v5925_v46, %v457_v13  ;;  %v63_v4 = vadd.f32 %v62_v49, %v61_v10  ;;  %v338_v29 = vand.u32 4294901760, %v5970_v58 }
  0x38   :  { %v75_v52 = vadd.f32 %v74_v23, %v73_v18  ;;  %v5050_v59 = vpack.c.bf16 %v333_v41, %v326_v9  ;;  %v71_v8 = vadd.f32 %v70_v63, %v69_v34  ;;  %v452_v47 = vand.u32 4294901760, %v451_v17 }
  0x39   :  { %v83_v60 = vadd.f32 %v82_v53, %v81_v3  ;;  %v459_v16 = vand.u32 4294901760, %v458_v7  ;;  %v64_v40 = vrot.slane %v63_v4, 1  ;;  %v339_v35 = vsub.f32 %v5970_v58, %v338_v29 }
  0x3a   :  { %v76_v33 = vrot.slane %v75_v52, 1  ;;  %5051 = vmatpush3.bf16.msra.mxu1 %v5050_v59  ;;  %v345_v62 = vand.u32 4294901760, %v5980_v5  ;;  %v7403_v23 = vand.u32 4294901760, %v5680_v31  ;;  %v7404_v17 = vand.u32 4294901760, %v5650_v15 }
  0x3b   :  { %v122_v56 = vsel %vm120_vm1, %v83_v60, %v71_v8  ;;  %v5052_v45 = vpack.c.bf16 %v459_v16, %v452_v47  ;;  %v65_v10 = vadd.f32 %v64_v40, %v63_v4  ;;  %v340_v9 = vand.u32 4294901760, %v339_v35 }
  0x3c   :  { %v5988_v46 = vand.u32 4294901760, %v122_v56  ;;  %v77_v18 = vadd.f32 %v76_v33, %v75_v52  ;;  %v346_v34 = vsub.f32 %v5980_v5, %v345_v62  ;;  %v7405_v52 = vand.u32 4294901760, %v5660_v21 }
  0x3d   :  { %5053 = vmatprep.subr.bf16.mxu1 %v5052_v45  ;;  %v5058_v45 = vpack.c.bf16 %v5660_v21, %v5650_v15  ;;  %v7406_v8 = vand.u32 4294901760, %v5671_v25  ;;  %v7407_v60 = vand.u32 4294901760, %v5673_v26  ;;  %v7409_v31 = vand.u32 4294901760, %v5690_v38 }
  0x3e   :  { %7397 = vst [vmem:[#allocation22_spill] sm:$0xff] %v5988_v46  ;;  %v5992_v3 = vsub.f32 %v122_v56, %v5988_v46  ;;  %v121_v63 = vsel %vm120_vm1, %v77_v18, %v65_v10  ;;  %462 = vmatprep.mubr.f32.mxu1 %v5988_v46  ;;  %v347_v49 = vand.u32 4294901760, %v346_v34  ;;  %v7402_v56 = vand.u32 4294901760, %v5678_v30 }
  0x3f   :  { %v5996_v7 = vand.u32 4294901760, %v121_v63  ;;  %v6018_v59 = vpack.c.bf16 %v7405_v52, %v7404_v17  ;;  %v6024_v40 = vpack.c.bf16 %v7407_v60, %v7406_v8  ;;  %v7408_v30 = vand.u32 4294901760, %v5688_v37 }
  0x40   :  { %7398 = vst [vmem:[#allocation23_spill] sm:$0xff] %v5992_v3  ;;  %v5999_v16 = vand.u32 4294901760, %v5992_v3  ;;  %v5054_v4 = vpack.c.bf16 %v347_v49, %v340_v9  ;;  %v6010_v41 = vpack.c.bf16 %v7403_v23, %v7402_v56  ;;  %v7411_v15 = vand.u32 4294901760, %v5698_v42 }
  0x41   :  { %7399 = vst [vmem:[#allocation24_spill] sm:$0xff] %v5996_v7  ;;  %v6002_v47 = vsub.f32 %v121_v63, %v5996_v7  ;;  %v6030_v33 = vpack.c.bf16 %v7409_v31, %v7408_v30  ;;  %v7412_v21 = vand.u32 4294901760, %v5700_v43  ;;  %v7413_v18 = vand.u32 4294901760, %v5727_v57 }
  0x42   :  { %7400 = vst [vmem:[#allocation25_spill] sm:$0xff] %v5999_v16  ;;  %v224_v53 = vsub.f32 %v5992_v3, %v5999_v16  ;;  %5055 = vmatpush3.bf16.msra.mxu1 %v5054_v4  ;;  %v7414_v9 = vand.u32 4294901760, %v5729_v61  ;;  %v7415_v63 = vand.u32 4294901760, %v5752_v11  ;;  %v7416_v49 = vand.u32 4294901760, %v5754_v12 }
  0x43   :  { %7401 = vst [vmem:[#allocation26_spill] sm:$0xff] %v6002_v47  ;;  %v6033_v35 = vand.u32 4294901760, %v6002_v47  ;;  %v6039_v10 = vpack.c.bf16 %v7412_v21, %v7411_v15  ;;  %5089 = vmatprep.subr.bf16.mxu1 %v5648_v14  ;;  %v7418_v4 = vand.u32 4294901760, %v5770_v36  ;;  %v7419_v17 = vand.u32 4294901760, %v5774_v48 }
  0x44   :  { %v6045_v34 = vpack.c.bf16 %v7414_v9, %v7413_v18  ;;  %v6051_v56 = vpack.c.bf16 %v7416_v49, %v7415_v63  ;;  %v6053_v23 = vand.u32 4294901760, %v224_v53  ;;  %v7420_v8 = vand.u32 4294901760, %v5789_v55 }
  0x45   :  { %7410 = vst [vmem:[#allocation27_spill] sm:$0xff] %v6033_v35  ;;  %v6060_v52 = vpack.c.bf16 %v7419_v17, %v7418_v4  ;;  %v7421_v60 = vand.u32 4294901760, %v5796_v0  ;;  %v7422_v31 = vand.u32 4294901760, %v5812_v28  ;;  %v7423_v15 = vand.u32 4294901760, %v5816_v50  ;;  %464 = vmatmul.mubr.f32.vlgmr.msra.gmra.mrb[0].mxu1 %v5996_v7  ;;  %v6397_v7 = vld [vmem:[%s7274_s10 + $0xd8] sm:$0xff] }
  0x46   :  { %7417 = vst [vmem:[#allocation28_spill] sm:$0xff] %v6053_v23  ;;  %v230_v21 = vsub.f32 %v6002_v47, %v6033_v35  ;;  %v7424_v18 = vand.u32 4294901760, %v5831_v24  ;;  %v7425_v9 = vand.u32 4294901760, %v5838_v19  ;;  %v7427_v49 = vand.u32 4294901760, %v5854_v32  ;;  %226 = vmatprep.mubr.f32.mxu0 %v6053_v23  ;;  %5091 = vmatpush3.bf16.msra.mxu1 %v5658_v20 }
  0x47   :  { %v6066_v30 = vpack.c.bf16 %v7421_v60, %v7420_v8  ;;  %v6072_v53 = vpack.c.bf16 %v7423_v15, %v7422_v31  ;;  %v7428_v4 = vand.u32 4294901760, %v5858_v6  ;;  %v7429_v8 = vand.u32 4294901760, %v5873_v2  ;;  %706 = vmatprep.mubr.f32.mxu1 %v5999_v16  ;;  %5093 = vmatprep.subr.bf16.mxu1 %v5662_v22 }
  0x48   :  { %v6080_v63 = vpack.c.bf16 %v7425_v9, %v7424_v18  ;;  %v7430_v60 = vand.u32 4294901760, %v5882_v1  ;;  %v7431_v15 = vand.u32 4294901760, %v5901_v54  ;;  %v7432_v18 = vand.u32 4294901760, %v5905_v44 }
  0x49   :  { %v6086_v17 = vpack.c.bf16 %v7428_v4, %v7427_v49  ;;  %v6104_v49 = vpack.c.bf16 %v345_v62, %v338_v29  ;;  %v6106_v4 = vand.u32 4294901760, %v230_v21  ;;  %v5064_v62 = vpack.c.bf16 %v5700_v43, %v5698_v42  ;;  %v7437_v43 = vld [vmem:[#allocation7_spill] sm:$0xff]  ;;  %v7438_v29 = vld [vmem:[#allocation8_spill] sm:$0xff] }
  0x4a   :  { %7426 = vst [vmem:[#allocation29_spill] sm:$0xff] %v6080_v63  ;;  %v6092_v31 = vpack.c.bf16 %v7430_v60, %v7429_v8  ;;  %v6100_v9 = vpack.c.bf16 %v7432_v18, %v7431_v15  ;;  %v6102_v63 = vpack.c.bf16 %v457_v13, %v450_v51  ;;  %v5060_v8 = vpack.c.bf16 %v5673_v26, %v5671_v25  ;;  %v7435_v13 = vld [vmem:[#allocation5_spill] sm:$0xff]  ;;  %v7445_v21 = vld [vmem:[#allocation12_spill] sm:$0xff]  ;;  %v6189_v18 = vld [vmem:[%s7274_s10 + $0x98] sm:$0xff] }
  0x4b   :  { %7433 = vst [vmem:[#allocation30_spill] sm:$0xff] %v6104_v49  ;;  %7434 = vst [vmem:[#allocation31_spill] sm:$0xff] %v6106_v4  ;;  %232 = vmatmul.mubr.f32.vlgmr.msra.gmra.mrb[0].mxu0 %v6106_v4  ;;  %v5062_v51 = vpack.c.bf16 %v5690_v38, %v5688_v37  ;;  %5095 = vmatpush3.bf16.msra.mxu1 %v5675_v27  ;;  %v5066_v25 = vpack.c.bf16 %v5729_v61, %v5727_v57  ;;  %v7436_v37 = vld [vmem:[#allocation6_spill] sm:$0xff]  ;;  %v6136_v57 = vld [vmem:[%s7274_s10 + $0x80] sm:$0xff]  ;;  %vm5558_vm2 = vmmov 0   ;;  %vm1904_vm3 = vcmask 31744  }
  0x4c   :  { %5059 = vmatpush3.bf16.msra.mxu0 %v5058_v45  ;;  %599 = vmatprep.mubr.f32.mxu0 %v5992_v3  ;;  %v5068_v26 = vpack.c.bf16 %v5754_v12, %v5752_v11  ;;  %v5070_v38 = vpack.c.bf16 %v5774_v48, %v5770_v36  ;;  %v5072_v42 = vpack.c.bf16 %v5796_v0, %v5789_v55  ;;  %v6141_v61 = vld [vmem:[%s7274_s10 + $0x88] sm:$0xff]  ;;  %v7440_v36 = vld [vmem:[#allocation9_spill] sm:$0xff]  ;;  %v7441_v48 = vld [vmem:[#allocation10_spill] sm:$0xff]  ;;  %v7334_v55 = vand.u32 4294901760, %v6136_v57 }
  0x4d   :  { %5061 = vmatprep.subr.bf16.mxu0 %v5060_v8  ;;  %5097 = vmatprep.subr.bf16.mxu1 %v5692_v39  ;;  %7439 = vst [vmem:[#allocation5_spill] sm:$0xff] %v6141_v61  ;;  %v5074_v11 = vpack.c.bf16 %v5816_v50, %v5812_v28  ;;  %v5076_v12 = vpack.c.bf16 %v5838_v19, %v5831_v24  ;;  %v7333_v0 = vand.u32 4294901760, %v6141_v61  ;;  %v6154_v45 = vld [vmem:[%s7274_s10] sm:$0xff]  ;;  %v6164_v24 = vld [vmem:[%s7274_s10 + $0x8] sm:$0xff]  ;;  %v6184_v15 = vld [vmem:[%s7274_s10 + $0x90] sm:$0xff]  ;;  %vm2371_vm4 = vcmask 130048  }
  0x4e   :  { %7442 = vst [vmem:[#allocation6_spill] sm:$0xff] %v6154_v45  ;;  %v5078_v28 = vpack.c.bf16 %v5858_v6, %v5854_v32  ;;  %v5080_v19 = vpack.c.bf16 %v5882_v1, %v5873_v2  ;;  %v7443_v50 = vld [vmem:[#allocation11_spill] sm:$0xff]  ;;  %7444 = vst [vmem:[#allocation7_spill] sm:$0xff] %v6164_v24  ;;  %v6170_v60 = vsub.f32 %v6136_v57, %v7334_v55  ;;  %v7332_v6 = vand.u32 4294901760, %v6154_v45 }
  0x4f   :  { %5099 = vmatpush3.bf16.msra.mxu1 %v7435_v13  ;;  %v6175_v32 = vsub.f32 %v6141_v61, %v7333_v0  ;;  %v5082_v1 = vpack.c.bf16 %v5905_v44, %v5901_v54  ;;  %v7335_v2 = vand.u32 4294901760, %v6164_v24  ;;  %7446 = vst [vmem:[#allocation8_spill] sm:$0xff] %v6184_v15  ;;  %7447 = vst [vmem:[#allocation9_spill] sm:$0xff] %v6189_v18  ;;  %v7448_v8 = vld [vmem:[#allocation15_spill] sm:$0xff]  ;;  %v6197_v44 = vld [vmem:[%s7274_s10 + $0x10] sm:$0xff] }
  0x50   :  { %5063 = vmatpush3.bf16.msra.mxu0 %v5062_v51  ;;  %5101 = vmatprep.subr.bf16.mxu1 %v7436_v37  ;;  %v7449_v51 = vld [vmem:[#allocation16_spill] sm:$0xff]  ;;  %7451 = vst [vmem:[#allocation10_spill] sm:$0xff] %v6197_v44  ;;  %v6202_v54 = vld [vmem:[%s7274_s10 + $0x18] sm:$0xff] }
  0x51   :  { %5065 = vmatprep.subr.bf16.mxu0 %v5064_v62  ;;  %v5084_v62 = vpack.c.bf16 %v7449_v51, %v7448_v8  ;;  %7452 = vst [vmem:[#allocation11_spill] sm:$0xff] %v6202_v54  ;;  %v5086_v8 = vpack.c.bf16 %v5980_v5, %v5970_v58  ;;  %v6234_v0 = vld [vmem:[%s7274_s10 + $0x28] sm:$0xff]  ;;  %v6239_v55 = vsub.f32 %v6164_v24, %v7335_v2  ;;  %v7458_v5 = vld [vmem:[#allocation17_spill] sm:$0xff]  ;;  %v7465_v58 = vand.u32 4294901760, %v6197_v44 }
  0x52   :  { %v6263_v51 = vld [vmem:[%s7274_s10 + $0xb0] sm:$0xff]  ;;  %v7466_v4 = vand.u32 4294901760, %v6202_v54 }
  0x53   :  { %5103 = vmatpush3.bf16.msra.mxu1 %v7437_v43  ;;  %v6284_v3 = vsub.f32 %v6197_v44, %v7465_v58  ;;  %v6305_v58 = vld [vmem:[%s7274_s10 + $0x38] sm:$0xff]  ;;  %v7480_v44 = vand.u32 4294901760, %v6263_v51 }
  0x54   :  { %5067 = vmatpush3.bf16.msra.mxu0 %v5066_v25  ;;  %5105 = vmatprep.subr.bf16.mxu1 %v7438_v29  ;;  %v7450_v25 = vld [vmem:[#allocation13_spill] sm:$0xff]  ;;  %v6289_v16 = vsub.f32 %v6202_v54, %v7466_v4  ;;  %7469 = vst [vmem:[#allocation34_spill] sm:$0xff] %v6305_v58 }
  0x55   :  { %5069 = vmatprep.subr.bf16.mxu0 %v5068_v26  ;;  %v6207_v26 = vld [vmem:[%s7274_s10 + $0xa0] sm:$0xff]  ;;  %7457 = vst [vmem:[#allocation13_spill] sm:$0xff] %v6234_v0 }
  0x56   :  { %7453 = vst [vmem:[#allocation12_spill] sm:$0xff] %v6207_v26 }
  0x57   :  { %5107 = vmatpush3.bf16.msra.mxu1 %v7440_v36 }
  0x58   :  { %5071 = vmatpush3.bf16.msra.mxu0 %v5070_v38  ;;  %5109 = vmatprep.subr.bf16.mxu1 %v7441_v48  ;;  %v7454_v38 = vld [vmem:[#allocation14_spill] sm:$0xff] }
  0x59   :  { %5073 = vmatprep.subr.bf16.mxu0 %v5072_v42  ;;  %v6213_v42 = vsub.f32 %v6154_v45, %v7332_v6  ;;  %7461 = vst [vmem:[#allocation14_spill] sm:$0xff] %v6263_v51 }
  0x5b   :  { %5111 = vmatpush3.bf16.msra.mxu1 %v7443_v50  ;;  %v7474_v54 = vand.u32 4294901760, %v6213_v42 }
  0x5c   :  { %5075 = vmatpush3.bf16.msra.mxu0 %v5074_v11  ;;  %5113 = vmatprep.subr.bf16.mxu1 %v7445_v21  ;;  %v6218_v11 = vld [vmem:[%s7274_s10 + $0xa8] sm:$0xff] }
  0x5d   :  { %5077 = vmatprep.subr.bf16.mxu0 %v5076_v12  ;;  %7455 = vst [vmem:[#allocation15_spill] sm:$0xff] %v6218_v11  ;;  %v7470_v4 = vand.u32 4294901760, %v6218_v11 }
  0x5f   :  { %5115 = vmatpush3.bf16.msra.mxu1 %v7450_v25 }
  0x60   :  { %5079 = vmatpush3.bf16.msra.mxu0 %v5078_v28  ;;  %5117 = vmatprep.subr.bf16.mxu1 %v7454_v38  ;;  %v7460_v28 = vand.u32 4294901760, %v6175_v32 }
  0x61   :  { %5081 = vmatprep.subr.bf16.mxu0 %v5080_v19  ;;  %v6225_v19 = vld [vmem:[%s7274_s10 + $0x20] sm:$0xff] }
  0x62   :  { %7456 = vst [vmem:[#allocation16_spill] sm:$0xff] %v6225_v19  ;;  %v6256_v12 = vsub.f32 %v6175_v32, %v7460_v28  ;;  %v7464_v28 = vand.u32 4294901760, %v6189_v18 }
  0x63   :  { %5119 = vmatpush3.bf16.msra.mxu1 %v7458_v5 }
  0x64   :  { %5083 = vmatpush3.bf16.msra.mxu0 %v5082_v1  ;;  %5153 = vmatprep.subr.bf16.mxu1 %v5648_v14  ;;  %v7459_v1 = vand.u32 4294901760, %v6170_v60  ;;  %v6268_v14 = vld [vmem:[%s7274_s10 + $0xb8] sm:$0xff] }
  0x65   :  { %5085 = vmatprep.subr.bf16.mxu0 %v5084_v62  ;;  %7462 = vst [vmem:[#allocation32_spill] sm:$0xff] %v6268_v14  ;;  %v6278_v62 = vsub.f32 %v6189_v18, %v7464_v28  ;;  %v7471_v28 = vand.u32 4294901760, %v6225_v19 }
  0x66   :  { %v6251_v2 = vsub.f32 %v6170_v60, %v7459_v1  ;;  %v7463_v1 = vand.u32 4294901760, %v6184_v15  ;;  %710 = vmatmul.mubr.f32.vlgmr.msra.gmra.mrb[2].mxu1 %v6033_v35 }
  0x67   :  { %5155 = vmatpush3.bf16.msra.mxu1 %v5658_v20  ;;  %v6317_v35 = vsub.f32 %v6225_v19, %v7471_v28  ;;  %980 = vmatprep.mubr.f32.mxu1 %v5988_v46  ;;  %v7473_v28 = vand.u32 4294901760, %v6234_v0  ;;  %v6383_v20 = vld [vmem:[%s7274_s10 + $0xd0] sm:$0xff] }
  0x68   :  { %v6273_v6 = vsub.f32 %v6184_v15, %v7463_v1  ;;  %5087 = vmatpush3.bf16.msra.mxu0 %v5086_v8  ;;  %v7467_v1 = vand.u32 4294901760, %v6207_v26  ;;  %v6300_v8 = vld [vmem:[%s7274_s10 + $0x30] sm:$0xff]  ;;  %5157 = vmatprep.subr.bf16.mxu1 %v5662_v22  ;;  %v6343_v22 = vld [vmem:[%s7274_s10 + $0xc8] sm:$0xff]  ;;  %7481 = vst [vmem:[#allocation40_spill] sm:$0xff] %v6383_v20 }
  0x69   :  { %7468 = vst [vmem:[#allocation33_spill] sm:$0xff] %v6300_v8  ;;  %5121 = vmatprep.subr.bf16.mxu0 %v6010_v41  ;;  %v6324_v41 = vld [vmem:[%s7274_s10 + $0xc0] sm:$0xff]  ;;  %v6333_v19 = vsub.f32 %v6234_v0, %v7473_v28  ;;  %7476 = vst [vmem:[#allocation37_spill] sm:$0xff] %v6343_v22  ;;  %v6358_v0 = vld [vmem:[%s7274_s10 + $0x48] sm:$0xff] }
  0x6a   :  { %v6294_v23 = vsub.f32 %v6207_v26, %v7467_v1  ;;  %v6312_v1 = vsub.f32 %v6218_v11, %v7470_v4  ;;  %7472 = vst [vmem:[#allocation35_spill] sm:$0xff] %v6324_v41  ;;  %v6338_v26 = vsub.f32 %v6213_v42, %v7474_v54  ;;  %v6353_v54 = vld [vmem:[%s7274_s10 + $0x40] sm:$0xff]  ;;  %7478 = vst [vmem:[#allocation39_spill] sm:$0xff] %v6358_v0  ;;  %v7479_v4 = vand.u32 4294901760, %v6239_v55 }
  0x6b   :  { %602 = vmatmul.mubr.f32.vlgmr.msra.gmra.mrb[2].mxu0 %v6002_v47  ;;  %7477 = vst [vmem:[#allocation38_spill] sm:$0xff] %v6353_v54  ;;  %5159 = vmatpush3.bf16.msra.mxu1 %v5675_v27  ;;  %v7483_v47 = vand.u32 4294901760, %v6273_v6  ;;  %v7484_v27 = vand.u32 4294901760, %v6278_v62  ;;  %v7502_v45 = vand.u32 4294901760, %v6358_v0 }
  0x6c   :  { %7475 = vst [vmem:[#allocation36_spill] sm:$0xff] %v6338_v26  ;;  %5123 = vmatpush3.bf16.msra.mxu0 %v6018_v59  ;;  %876 = vmatprep.mubr.f32.mxu0 %v5988_v46  ;;  %v6365_v11 = vsub.f32 %v6239_v55, %v7479_v4  ;;  %v6375_v59 = vsub.f32 %v6263_v51, %v7480_v44  ;;  %v7486_v4 = vand.u32 4294901760, %v6305_v58  ;;  %v7495_v49 = vand.u32 4294901760, %v6312_v1  ;;  %v6505_v26 = vld [vmem:[%s7274_s10 + $0xf8] sm:$0xff] }
  0x6d   :  { %5125 = vmatprep.subr.bf16.mxu0 %v6024_v40  ;;  %5161 = vmatprep.subr.bf16.mxu1 %v5692_v39  ;;  %v7482_v40 = vand.u32 4294901760, %v6268_v14  ;;  %v6402_v39 = vsub.f32 %v6273_v6, %v7483_v47  ;;  %v6407_v28 = vsub.f32 %v6278_v62, %v7484_v27  ;;  %v6422_v47 = vld [vmem:[%s7274_s10 + $0x50] sm:$0xff]  ;;  %v7487_v27 = vand.u32 4294901760, %v6284_v3  ;;  %7504 = vst [vmem:[#allocation50_spill] sm:$0xff] %v6505_v26 }
  0x6e   :  { %v6471_v24 = vsub.f32 %v6312_v1, %v7495_v49  ;;  %v7500_v49 = vand.u32 4294901760, %v6353_v54 }
  0x6f   :  { %v6390_v44 = vsub.f32 %v6268_v14, %v7482_v40  ;;  %v7485_v40 = vand.u32 4294901760, %v6300_v8  ;;  %v6417_v14 = vsub.f32 %v6305_v58, %v7486_v4  ;;  %v6428_v51 = vsub.f32 %v6284_v3, %v7487_v27  ;;  %v6449_v27 = vld [vmem:[%s7274_s10 + $0xe0] sm:$0xff]  ;;  %5163 = vmatpush3.bf16.msra.mxu1 %v7435_v13  ;;  %v6482_v13 = vld [vmem:[%s7274_s10 + $0x68] sm:$0xff] }
  0x70   :  { %5127 = vmatpush3.bf16.msra.mxu0 %v6030_v33  ;;  %v7489_v4 = vand.u32 4294901760, %v6324_v41  ;;  %v6444_v33 = vld [vmem:[%s7274_s10 + $0x58] sm:$0xff]  ;;  %7491 = vst [vmem:[#allocation42_spill] sm:$0xff] %v6449_v27  ;;  %7496 = vst [vmem:[#allocation44_spill] sm:$0xff] %v6471_v24  ;;  %5165 = vmatprep.subr.bf16.mxu1 %v7436_v37  ;;  %v6510_v37 = vld [vmem:[%s7274_s10 + $0x70] sm:$0xff]  ;;  %v7508_v24 = vand.u32 4294901760, %v6397_v7 }
  0x71   :  { %v6412_v46 = vsub.f32 %v6300_v8, %v7485_v40  ;;  %v7488_v40 = vand.u32 4294901760, %v6289_v16  ;;  %7490 = vst [vmem:[#allocation41_spill] sm:$0xff] %v6444_v33  ;;  %5129 = vmatprep.subr.bf16.mxu0 %v6039_v10  ;;  %v6477_v10 = vld [vmem:[%s7274_s10 + $0x60] sm:$0xff]  ;;  %7498 = vst [vmem:[#allocation46_spill] sm:$0xff] %v6482_v13 }
  0x72   :  { %v6438_v58 = vsub.f32 %v6324_v41, %v7489_v4  ;;  %v7492_v4 = vand.u32 4294901760, %v6343_v22  ;;  %v7493_v41 = vand.u32 4294901760, %v6294_v23  ;;  %7497 = vst [vmem:[#allocation45_spill] sm:$0xff] %v6477_v10  ;;  %7505 = vst [vmem:[#allocation51_spill] sm:$0xff] %v6510_v37  ;;  %v6535_v61 = vsub.f32 %v6397_v7, %v7508_v24 }
  0x73   :  { %v6433_v8 = vsub.f32 %v6289_v16, %v7488_v40  ;;  %v6454_v40 = vld [vmem:[%s7274_s10 + $0xe8] sm:$0xff]  ;;  %5167 = vmatpush3.bf16.msra.mxu1 %v7437_v43  ;;  %v7516_v43 = vand.u32 4294901760, %v6477_v10 }
  0x74   :  { %v6461_v18 = vsub.f32 %v6343_v22, %v7492_v4  ;;  %v6466_v15 = vsub.f32 %v6294_v23, %v7493_v41  ;;  %v6487_v41 = vld [vmem:[%s7274_s10 + $0xf0] sm:$0xff]  ;;  %v6493_v4 = vsub.f32 %v6353_v54, %v7500_v49  ;;  %v6498_v22 = vsub.f32 %v6358_v0, %v7502_v45  ;;  %5131 = vmatpush3.bf16.msra.mxu0 %v6045_v34 }
  0x75   :  { %7499 = vst [vmem:[#allocation47_spill] sm:$0xff] %v6487_v41  ;;  %v7507_v0 = vand.u32 4294901760, %v6383_v20  ;;  %5133 = vmatprep.subr.bf16.mxu0 %v6051_v56  ;;  %7509 = vst [vmem:[#allocation53_spill] sm:$0xff] %v6535_v61  ;;  %5169 = vmatprep.subr.bf16.mxu1 %v7438_v29  ;;  %v7510_v49 = vand.u32 4294901760, %v6422_v47  ;;  %v7512_v34 = vand.u32 4294901760, %v6444_v33  ;;  %v7514_v29 = vand.u32 4294901760, %v6449_v27 }
  0x76   :  { %7494 = vst [vmem:[#allocation43_spill] sm:$0xff] %v6466_v15  ;;  %7501 = vst [vmem:[#allocation48_spill] sm:$0xff] %v6493_v4  ;;  %v6519_v15 = vld [vmem:[%s7274_s10 + $0x78] sm:$0xff]  ;;  %v7515_v45 = vand.u32 4294901760, %v6454_v40 }
  0x77   :  { %7503 = vst [vmem:[#allocation49_spill] sm:$0xff] %v6498_v22  ;;  %7506 = vst [vmem:[#allocation52_spill] sm:$0xff] %v6519_v15  ;;  %v6525_v5 = vsub.f32 %v6383_v20, %v7507_v0  ;;  %v6548_v24 = vsub.f32 %v6422_v47, %v7510_v49  ;;  %v6553_v0 = vsub.f32 %v6444_v33, %v7512_v34  ;;  %v7517_v34 = vand.u32 4294901760, %v6482_v13 }
  0x78   :  { %v6558_v54 = vsub.f32 %v6449_v27, %v7514_v29  ;;  %v6563_v56 = vsub.f32 %v6454_v40, %v7515_v45  ;;  %5135 = vmatpush3.bf16.msra.mxu0 %v6060_v52  ;;  %v6570_v20 = vsub.f32 %v6477_v10, %v7516_v43  ;;  %v7518_v29 = vand.u32 4294901760, %v6487_v41  ;;  %5171 = vmatpush3.bf16.msra.mxu1 %v7440_v36 }
  0x79   :  { %7511 = vst [vmem:[#allocation54_spill] sm:$0xff] %v6548_v24  ;;  %7513 = vst [vmem:[#allocation55_spill] sm:$0xff] %v6553_v0  ;;  %v6575_v33 = vsub.f32 %v6482_v13, %v7517_v34  ;;  %5137 = vmatprep.subr.bf16.mxu0 %v6066_v30  ;;  %v7519_v43 = vand.u32 4294901760, %v6505_v26  ;;  %v7520_v34 = vand.u32 4294901760, %v6510_v37  ;;  %5173 = vmatprep.subr.bf16.mxu1 %v7441_v48  ;;  %v7521_v45 = vand.u32 4294901760, %v6519_v15  ;;  %v7522_v30 = vld [vmem:[#allocation20_spill] sm:$0xff] }
  0x7a   :  { %v6580_v27 = vsub.f32 %v6487_v41, %v7518_v29  ;;  %v7523_v41 = vld [vmem:[#allocation18_spill] sm:$0xff]  ;;  %v7527_v48 = vand.u32 4294901760, %v6170_v60  ;;  %v7528_v36 = vand.u32 4294901760, %v6175_v32 }
  0x7b   :  { %v6589_v49 = vsub.f32 %v6505_v26, %v7519_v43  ;;  %v6594_v13 = vsub.f32 %v6510_v37, %v7520_v34  ;;  %v6603_v52 = vsub.f32 %v6519_v15, %v7521_v45  ;;  %v50_v45 = vadd.f32 %v7523_v41, %v7522_v30  ;;  %v7524_v15 = vld [vmem:[#allocation29_spill] sm:$0xff]  ;;  %v7526_v43 = vld [vmem:[#allocation19_spill] sm:$0xff] }
  0x7c   :  { %5139 = vmatpush3.bf16.msra.mxu0 %v6072_v53  ;;  %5175 = vmatpush3.bf16.msra.mxu1 %v7443_v50  ;;  %v7525_v37 = vld [vmem:[#allocation21_spill] sm:$0xff]  ;;  %v6625_v10 = vpack.c.bf16 %v7528_v36, %v7527_v48  ;;  %v7530_v50 = vand.u32 4294901760, %v6213_v42  ;;  %v7533_v34 = vand.u32 4294901760, %v6273_v6  ;;  %v7536_v36 = vand.u32 4294901760, %v6284_v3 }
  0x7d   :  { %5141 = vmatprep.subr.bf16.mxu0 %v7524_v15  ;;  %v55_v53 = vadd.f32 %v7526_v43, %v7525_v37  ;;  %5177 = vmatprep.subr.bf16.mxu1 %v7445_v21  ;;  %v7531_v15 = vand.u32 4294901760, %v6239_v55  ;;  %v7534_v37 = vand.u32 4294901760, %v6278_v62  ;;  %v7537_v48 = vand.u32 4294901760, %v6289_v16 }
  0x7e   :  { %7529 = vst [vmem:[#allocation20_spill] sm:$0xff] %v6625_v10  ;;  %51 = vadd.xlane.f32.xlu0 %v50_v45  ;;  %v7539_v45 = vand.u32 4294901760, %v6294_v23  ;;  %v7540_v41 = vand.u32 4294901760, %v6312_v1 }
  0x7f   :  { %v6633_v30 = vpack.c.bf16 %v7531_v15, %v7530_v50  ;;  %v6639_v43 = vpack.c.bf16 %v7534_v37, %v7533_v34  ;;  %v6645_v21 = vpack.c.bf16 %v7537_v48, %v7536_v36  ;;  %v7542_v50 = vand.u32 4294901760, %v6317_v35 }
  0x80   :  { %v6651_v26 = vpack.c.bf16 %v7540_v41, %v7539_v45  ;;  %v7543_v15 = vand.u32 4294901760, %v6333_v19  ;;  %v7545_v34 = vand.u32 4294901760, %v6375_v59  ;;  %v7546_v37 = vand.u32 4294901760, %v6390_v44  ;;  %5143 = vmatpush3.bf16.msra.mxu0 %v6086_v17  ;;  %5179 = vmatpush3.bf16.msra.mxu1 %v7450_v25 }
  0x81   :  { %7532 = vst [vmem:[#allocation18_spill] sm:$0xff] %v6633_v30  ;;  %7535 = vst [vmem:[#allocation29_spill] sm:$0xff] %v6639_v43  ;;  %v7548_v36 = vand.u32 4294901760, %v6412_v46  ;;  %v7549_v48 = vand.u32 4294901760, %v6417_v14  ;;  %v7551_v41 = vand.u32 4294901760, %v6438_v58  ;;  %v7552_v45 = vand.u32 4294901760, %v6461_v18  ;;  %5145 = vmatprep.subr.bf16.mxu0 %v6092_v31  ;;  %5181 = vmatprep.subr.bf16.mxu1 %v7454_v38 }
  0x82   :  { %7538 = vst [vmem:[#allocation21_spill] sm:$0xff] %v6645_v21  ;;  %7541 = vst [vmem:[#allocation19_spill] sm:$0xff] %v6651_v26  ;;  %v6657_v29 = vpack.c.bf16 %v7543_v15, %v7542_v50  ;;  %v6663_v43 = vpack.c.bf16 %v7546_v37, %v7545_v34  ;;  %v7554_v15 = vand.u32 4294901760, %v6493_v4  ;;  %v7557_v37 = vand.u32 4294901760, %v6525_v5  ;;  %56 = vadd.xlane.f32.xlu0 %v55_v53 }
  0x83   :  { %v6669_v21 = vpack.c.bf16 %v7549_v48, %v7548_v36  ;;  %v6676_v50 = vpack.c.bf16 %v7552_v45, %v7551_v41  ;;  %v7560_v17 = vand.u32 4294901760, %v6548_v24  ;;  %v7561_v48 = vand.u32 4294901760, %v6553_v0 }
  0x84   :  { %7544 = vst [vmem:[#allocation56_spill] sm:$0xff] %v6657_v29  ;;  %7547 = vst [vmem:[#allocation57_spill] sm:$0xff] %v6663_v43  ;;  %v7555_v29 = vand.u32 4294901760, %v6498_v22  ;;  %v7558_v43 = vand.u32 4294901760, %v6535_v61  ;;  %v1144_v41 = vand.u32 4294901760, %v6365_v11  ;;  %v7564_v45 = vand.u32 4294901760, %v6563_v56  ;;  %5147 = vmatpush3.bf16.msra.mxu0 %v6100_v9 }
  0x85   :  { %7550 = vst [vmem:[#allocation58_spill] sm:$0xff] %v6669_v21  ;;  %7553 = vst [vmem:[#allocation59_spill] sm:$0xff] %v6676_v50  ;;  %v6694_v21 = vpack.c.bf16 %v7561_v48, %v7560_v17  ;;  %v7569_v17 = vand.u32 4294901760, %v6580_v27  ;;  %v7570_v31 = vand.u32 4294901760, %v6589_v49  ;;  %v7572_v25 = vand.u32 4294901760, %v6251_v2  ;;  %5149 = vmatprep.subr.bf16.mxu0 %v6102_v63  ;;  %v7582_v9 = vld [vmem:[#allocation17_spill] sm:$0xff] }
  0x86   :  { %v6682_v34 = vpack.c.bf16 %v7555_v29, %v7554_v15  ;;  %v6688_v36 = vpack.c.bf16 %v7558_v43, %v7557_v37  ;;  %v7563_v29 = vand.u32 4294901760, %v6558_v54  ;;  %v7566_v43 = vand.u32 4294901760, %v6570_v20  ;;  %5183 = vmatpush3.bf16.msra.mxu1 %v7582_v9  ;;  %v7591_v9 = vld [vmem:[#allocation7_spill] sm:$0xff] }
  0x87   :  { %7562 = vst [vmem:[#allocation62_spill] sm:$0xff] %v6694_v21  ;;  %v7567_v37 = vand.u32 4294901760, %v6575_v33  ;;  %v6715_v48 = vpack.c.bf16 %v7570_v31, %v7569_v17  ;;  %v7573_v11 = vand.u32 4294901760, %v6256_v12  ;;  %v1151_v38 = vand.u32 4294901760, %v6428_v51  ;;  %v7580_v31 = vld [vmem:[#allocation5_spill] sm:$0xff]  ;;  %v7583_v51 = vld [vmem:[#allocation36_spill] sm:$0xff] }
  0x88   :  { %7556 = vst [vmem:[#allocation60_spill] sm:$0xff] %v6682_v34  ;;  %7559 = vst [vmem:[#allocation61_spill] sm:$0xff] %v6688_v36  ;;  %v6703_v15 = vpack.c.bf16 %v7564_v45, %v7563_v29  ;;  %v1263_v45 = vand.u32 4294901760, %v6402_v39  ;;  %v1158_v2 = vand.u32 4294901760, %v6433_v8  ;;  %v7577_v12 = vand.u32 4294901760, %v6317_v35 }
  0x89   :  { %v6709_v36 = vpack.c.bf16 %v7567_v37, %v7566_v43  ;;  %7571 = vst [vmem:[#allocation65_spill] sm:$0xff] %v6715_v48  ;;  %v5216_v29 = vpack.c.bf16 %v7573_v11, %v7572_v25  ;;  %v7574_v43 = vand.u32 4294901760, %v6594_v13  ;;  %v7575_v37 = vand.u32 4294901760, %v6603_v52 }
  0x8a   :  { %7565 = vst [vmem:[#allocation63_spill] sm:$0xff] %v6703_v15  ;;  %v1270_v15 = vand.u32 4294901760, %v6407_v28  ;;  %v1164_v17 = vsub.f32 %v6317_v35, %v7577_v12  ;;  %v7578_v39 = vand.u32 4294901760, %v6333_v19  ;;  %v7579_v53 = vand.u32 4294901760, %v6136_v57  ;;  %v7586_v12 = vld [vmem:[#allocation44_spill] sm:$0xff] }
  0x8b   :  { %7568 = vst [vmem:[#allocation64_spill] sm:$0xff] %v6709_v36  ;;  %v6728_v36 = vpack.c.bf16 %v7575_v37, %v7574_v43  ;;  %v7581_v25 = vand.u32 4294901760, %v7580_v31  ;;  %v7584_v8 = vand.u32 4294901760, %v7583_v51  ;;  %v7585_v37 = vld [vmem:[#allocation43_spill] sm:$0xff]  ;;  %v1284_v48 = vand.u32 4294901760, %v7586_v12  ;;  %5217 = vmatprep.subr.bf16.mxu1 %v5216_v29  ;;  %v7589_v31 = vld [vmem:[#allocation6_spill] sm:$0xff] }
  0x8c   :  { %v1171_v28 = vsub.f32 %v6333_v19, %v7578_v39  ;;  %v5220_v21 = vpack.c.bf16 %v1270_v15, %v1263_v45  ;;  %v7587_v39 = vand.u32 4294901760, %v6375_v59  ;;  %v7588_v57 = vand.u32 4294901760, %v6390_v44  ;;  %v7596_v29 = vld [vmem:[#allocation9_spill] sm:$0xff]  ;;  %v7598_v12 = vld [vmem:[#allocation24_spill] sm:$0xff] }
  0x8d   :  { %7576 = vst [vmem:[#allocation66_spill] sm:$0xff] %v6728_v36  ;;  %v6744_v11 = vpack.c.bf16 %v7581_v25, %v7579_v53  ;;  %v5218_v43 = vpack.c.bf16 %v1144_v41, %v7584_v8  ;;  %v1277_v36 = vand.u32 4294901760, %v7585_v37  ;;  %v7590_v25 = vand.u32 4294901760, %v7589_v31  ;;  %v7593_v41 = vld [vmem:[#allocation30_spill] sm:$0xff]  ;;  %v7594_v8 = vld [vmem:[#allocation8_spill] sm:$0xff]  ;;  %982 = vmatmul.mubr.f32.vlgmr.msra.gmra.mrb[4].mxu1 %v7598_v12 }
  0x8e   :  { %v1290_v63 = vsub.f32 %v6375_v59, %v7587_v39  ;;  %v1297_v53 = vsub.f32 %v6390_v44, %v7588_v57  ;;  %v7592_v34 = vand.u32 4294901760, %v7591_v9  ;;  %5151 = vmatpush3.bf16.msra.mxu0 %v7593_v41  ;;  %v7595_v37 = vand.u32 4294901760, %v7594_v8 }
  0x8f   :  { %v7597_v15 = vand.u32 4294901760, %v7596_v29  ;;  %v5222_v39 = vpack.c.bf16 %v1158_v2, %v1151_v38  ;;  %v1165_v50 = vand.u32 4294901760, %v1164_v17  ;;  %v1172_v26 = vand.u32 4294901760, %v1171_v28  ;;  %5185 = vmatprep.subr.bf16.mxu0 %v6744_v11  ;;  %5219 = vmatpush3.bf16.msra.mxu1 %v5218_v43  ;;  %v7606_v43 = vld [vmem:[#allocation11_spill] sm:$0xff] }
  0x90   :  { %v6761_v51 = vpack.c.bf16 %v7592_v34, %v7590_v25  ;;  %v5224_v57 = vpack.c.bf16 %v1284_v48, %v1277_v36  ;;  %v7599_v34 = vand.u32 4294901760, %v6412_v46  ;;  %v7600_v25 = vand.u32 4294901760, %v6417_v14  ;;  %5221 = vmatprep.subr.bf16.mxu1 %v5220_v21  ;;  %v7603_v36 = vld [vmem:[#allocation22_spill] sm:$0xff]  ;;  %v7608_v21 = vld [vmem:[#allocation12_spill] sm:$0xff] }
  0x91   :  { %v6768_v45 = vpack.c.bf16 %v7597_v15, %v7595_v37  ;;  %v1291_v41 = vand.u32 4294901760, %v1290_v63  ;;  %v1298_v8 = vand.u32 4294901760, %v1297_v53  ;;  %v7601_v37 = vand.u32 4294901760, %v6438_v58  ;;  %1357 = vmatprep.mubr.f32.mxu1 %v7603_v36  ;;  %878 = vmatmul.mubr.f32.vlgmr.msra.gmra.mrb[4].mxu0 %v7598_v12  ;;  %v7604_v48 = vld [vmem:[#allocation10_spill] sm:$0xff]  ;;  %v7610_v53 = vld [vmem:[#allocation15_spill] sm:$0xff] }
  0x92   :  { %v1178_v31 = vsub.f32 %v6412_v46, %v7599_v34  ;;  %v1185_v9 = vsub.f32 %v6417_v14, %v7600_v25  ;;  %v7602_v2 = vand.u32 4294901760, %v6461_v18  ;;  %v7605_v28 = vand.u32 4294901760, %v7604_v48  ;;  %5187 = vmatpush3.bf16.msra.mxu0 %v6761_v51 }
  0x93   :  { %v1304_v38 = vsub.f32 %v6438_v58, %v7601_v37  ;;  %v7607_v29 = vand.u32 4294901760, %v7606_v43  ;;  %v7609_v63 = vand.u32 4294901760, %v7608_v21  ;;  %v7611_v34 = vand.u32 4294901760, %v7610_v53  ;;  %v7614_v43 = vld [vmem:[#allocation28_spill] sm:$0xff]  ;;  %5189 = vmatprep.subr.bf16.mxu0 %v6768_v45  ;;  %5223 = vmatpush3.bf16.msra.mxu1 %v5222_v39 }
  0x94   :  { %v1311_v17 = vsub.f32 %v6461_v18, %v7602_v2  ;;  %v5226_v37 = vpack.c.bf16 %v1172_v26, %v1165_v50  ;;  %v7612_v2 = vand.u32 4294901760, %v6493_v4  ;;  %v7613_v36 = vand.u32 4294901760, %v6498_v22  ;;  %1121 = vmatprep.mubr.f32.mxu0 %v7614_v43  ;;  %5225 = vmatprep.subr.bf16.mxu1 %v5224_v57  ;;  %v7619_v43 = vld [vmem:[#allocation13_spill] sm:$0xff] }
  0x95   :  { %v6790_v15 = vpack.c.bf16 %v7607_v29, %v7605_v28  ;;  %v6796_v25 = vpack.c.bf16 %v7611_v34, %v7609_v63  ;;  %v1179_v28 = vand.u32 4294901760, %v1178_v31  ;;  %v1186_v29 = vand.u32 4294901760, %v1185_v9 }
  0x96   :  { %v1192_v30 = vsub.f32 %v6493_v4, %v7612_v2  ;;  %v1199_v48 = vsub.f32 %v6498_v22, %v7613_v36  ;;  %v7615_v21 = vand.u32 4294901760, %v6525_v5  ;;  %v7616_v26 = vand.u32 4294901760, %v6535_v61  ;;  %v7617_v36 = vld [vmem:[#allocation16_spill] sm:$0xff] }
  0x97   :  { %v5228_v53 = vpack.c.bf16 %v1298_v8, %v1291_v41  ;;  %v1305_v34 = vand.u32 4294901760, %v1304_v38  ;;  %v1312_v2 = vand.u32 4294901760, %v1311_v17  ;;  %v7618_v10 = vand.u32 4294901760, %v7617_v36  ;;  %5191 = vmatpush3.bf16.msra.mxu0 %v6790_v15  ;;  %v7623_v41 = vld [vmem:[#allocation14_spill] sm:$0xff]  ;;  %v7625_v38 = vld [vmem:[#allocation32_spill] sm:$0xff]  ;;  %5227 = vmatpush3.bf16.msra.mxu1 %v5226_v37  ;;  %v7633_v37 = vld [vmem:[#allocation35_spill] sm:$0xff] }
  0x98   :  { %v1318_v63 = vsub.f32 %v6525_v5, %v7615_v21  ;;  %v1325_v50 = vsub.f32 %v6535_v61, %v7616_v26  ;;  %v7620_v22 = vand.u32 4294901760, %v7619_v43  ;;  %v1193_v39 = vand.u32 4294901760, %v1192_v30  ;;  %5193 = vmatprep.subr.bf16.mxu0 %v6796_v25  ;;  %v7631_v61 = vld [vmem:[#allocation34_spill] sm:$0xff] }
  0x99   :  { %v1200_v31 = vand.u32 4294901760, %v1199_v48  ;;  %v7621_v9 = vand.u32 4294901760, %v6548_v24  ;;  %v7622_v26 = vand.u32 4294901760, %v6553_v0  ;;  %v7624_v8 = vand.u32 4294901760, %v7623_v41  ;;  %5229 = vmatprep.subr.bf16.mxu1 %v5228_v53 }
  0x9a   :  { %v6817_v4 = vpack.c.bf16 %v7620_v22, %v7618_v10  ;;  %v7626_v17 = vand.u32 4294901760, %v7625_v38  ;;  %v5230_v10 = vpack.c.bf16 %v1186_v29, %v1179_v28  ;;  %v1319_v30 = vand.u32 4294901760, %v1318_v63  ;;  %v7635_v29 = vld [vmem:[#allocation37_spill] sm:$0xff] }
  0x9b   :  { %v1206_v21 = vsub.f32 %v6548_v24, %v7621_v9  ;;  %v1213_v57 = vsub.f32 %v6553_v0, %v7622_v26  ;;  %v1326_v48 = vand.u32 4294901760, %v1325_v50  ;;  %v5232_v36 = vpack.c.bf16 %v1312_v2, %v1305_v34  ;;  %v7629_v24 = vld [vmem:[#allocation33_spill] sm:$0xff] }
  0x9c   :  { %v6831_v22 = vpack.c.bf16 %v7626_v17, %v7624_v8  ;;  %v7627_v43 = vand.u32 4294901760, %v6558_v54  ;;  %v7628_v26 = vand.u32 4294901760, %v6563_v56  ;;  %v7630_v41 = vand.u32 4294901760, %v7629_v24  ;;  %5195 = vmatpush3.bf16.msra.mxu0 %v6817_v4  ;;  %5231 = vmatpush3.bf16.msra.mxu1 %v5230_v10 }
  0x9d   :  { %v7632_v38 = vand.u32 4294901760, %v7631_v61  ;;  %v7634_v28 = vand.u32 4294901760, %v7633_v37  ;;  %v7636_v63 = vand.u32 4294901760, %v7635_v29  ;;  %v5234_v53 = vpack.c.bf16 %v1200_v31, %v1193_v39  ;;  %5233 = vmatprep.subr.bf16.mxu1 %v5232_v36  ;;  %v7645_v29 = vld [vmem:[#allocation40_spill] sm:$0xff] }
  0x9e   :  { %v1332_v9 = vsub.f32 %v6558_v54, %v7627_v43  ;;  %v1339_v0 = vsub.f32 %v6563_v56, %v7628_v26  ;;  %v1207_v34 = vand.u32 4294901760, %v1206_v21  ;;  %v1214_v2 = vand.u32 4294901760, %v1213_v57  ;;  %5197 = vmatprep.subr.bf16.mxu0 %v6831_v22  ;;  %v7641_v57 = vld [vmem:[#allocation38_spill] sm:$0xff] }
  0x9f   :  { %v6843_v8 = vpack.c.bf16 %v7632_v38, %v7630_v41  ;;  %v6850_v50 = vpack.c.bf16 %v7636_v63, %v7634_v28  ;;  %v5236_v17 = vpack.c.bf16 %v1326_v48, %v1319_v30  ;;  %v7637_v24 = vand.u32 4294901760, %v6570_v20  ;;  %v7643_v30 = vld [vmem:[#allocation39_spill] sm:$0xff] }
  0xa0   :  { %v7638_v43 = vand.u32 4294901760, %v6575_v33  ;;  %v1333_v41 = vand.u32 4294901760, %v1332_v9  ;;  %v1340_v38 = vand.u32 4294901760, %v1339_v0  ;;  %v7639_v37 = vand.u32 4294901760, %v6580_v27  ;;  %5235 = vmatpush3.bf16.msra.mxu1 %v5234_v53 }
  0xa1   :  { %v1220_v61 = vsub.f32 %v6570_v20, %v7637_v24  ;;  %v7640_v31 = vand.u32 4294901760, %v6589_v49  ;;  %5199 = vmatpush3.bf16.msra.mxu0 %v6843_v8  ;;  %v7642_v10 = vand.u32 4294901760, %v7641_v57  ;;  %v7644_v48 = vand.u32 4294901760, %v7643_v30  ;;  %5237 = vmatprep.subr.bf16.mxu1 %v5236_v17 }
  0xa2   :  { %v1227_v26 = vsub.f32 %v6575_v33, %v7638_v43  ;;  %v1346_v39 = vsub.f32 %v6580_v27, %v7639_v37  ;;  %v7646_v36 = vand.u32 4294901760, %v7645_v29  ;;  %v7647_v0 = vand.u32 4294901760, %v6397_v7  ;;  %5201 = vmatprep.subr.bf16.mxu0 %v6850_v50 }
  0xa3   :  { %v1353_v21 = vsub.f32 %v6589_v49, %v7640_v31  ;;  %v6870_v28 = vpack.c.bf16 %v7644_v48, %v7642_v10  ;;  %v5238_v63 = vpack.c.bf16 %v1214_v2, %v1207_v34  ;;  %v1221_v24 = vand.u32 4294901760, %v1220_v61  ;;  %v7651_v2 = vld [vmem:[#allocation41_spill] sm:$0xff] }
  0xa4   :  { %v6876_v9 = vpack.c.bf16 %v7647_v0, %v7646_v36  ;;  %v1228_v43 = vand.u32 4294901760, %v1227_v26  ;;  %v7648_v37 = vand.u32 4294901760, %v6594_v13  ;;  %v7649_v57 = vand.u32 4294901760, %v6603_v52  ;;  %v7653_v26 = vld [vmem:[#allocation42_spill] sm:$0xff] }
  0xa5   :  { %v5240_v30 = vpack.c.bf16 %v1340_v38, %v1333_v41  ;;  %v1347_v48 = vand.u32 4294901760, %v1346_v39  ;;  %v1354_v7 = vand.u32 4294901760, %v1353_v21  ;;  %5203 = vmatpush3.bf16.msra.mxu0 %v6870_v28  ;;  %v7650_v34 = vand.u32 4294901760, %v6422_v47  ;;  %5239 = vmatpush3.bf16.msra.mxu1 %v5238_v63  ;;  %v7656_v47 = vld [vmem:[#allocation45_spill] sm:$0xff] }
  0xa6   :  { %v1234_v31 = vsub.f32 %v6594_v13, %v7648_v37  ;;  %v1241_v10 = vsub.f32 %v6603_v52, %v7649_v57  ;;  %v7652_v53 = vand.u32 4294901760, %v7651_v2  ;;  %5205 = vmatprep.subr.bf16.mxu0 %v6876_v9  ;;  %v7654_v29 = vand.u32 4294901760, %v7653_v26  ;;  %v7658_v37 = vld [vmem:[#allocation46_spill] sm:$0xff]  ;;  %v7660_v2 = vld [vmem:[#allocation47_spill] sm:$0xff] }
  0xa7   :  { %v7655_v36 = vand.u32 4294901760, %v6454_v40  ;;  %v5242_v17 = vpack.c.bf16 %v1228_v43, %v1221_v24  ;;  %5241 = vmatprep.subr.bf16.mxu1 %v5240_v30  ;;  %v5244_v39 = vpack.c.bf16 %v1354_v7, %v1347_v48  ;;  %v7657_v21 = vand.u32 4294901760, %v7656_v47  ;;  %v7664_v43 = vld [vmem:[#allocation51_spill] sm:$0xff] }
  0xa8   :  { %v6890_v61 = vpack.c.bf16 %v7652_v53, %v7650_v34  ;;  %v1235_v41 = vand.u32 4294901760, %v1234_v31  ;;  %v1242_v38 = vand.u32 4294901760, %v1241_v10  ;;  %v7659_v57 = vand.u32 4294901760, %v7658_v37  ;;  %v7662_v53 = vld [vmem:[#allocation50_spill] sm:$0xff]  ;;  %v7666_v10 = vld [vmem:[#allocation52_spill] sm:$0xff] }
  0xa9   :  { %v6897_v0 = vpack.c.bf16 %v7655_v36, %v7654_v29  ;;  %v7661_v40 = vand.u32 4294901760, %v7660_v2  ;;  %v7663_v26 = vand.u32 4294901760, %v7662_v53  ;;  %5243 = vmatpush3.bf16.msra.mxu1 %v5242_v17  ;;  %v7665_v31 = vand.u32 4294901760, %v7664_v43  ;;  %v7668_v17 = vld [vmem:[#allocation25_spill] sm:$0xff] }
  0xaa   :  { %5207 = vmatpush3.bf16.msra.mxu0 %v6890_v61  ;;  %v6904_v34 = vpack.c.bf16 %v7659_v57, %v7657_v21  ;;  %v5246_v24 = vpack.c.bf16 %v1242_v38, %v1235_v41  ;;  %5245 = vmatprep.subr.bf16.mxu1 %v5244_v39  ;;  %v7667_v30 = vand.u32 4294901760, %v7666_v10  ;;  %v5248_v7 = vpack.c.bf16 %v6175_v32, %v6170_v60  ;;  %v7669_v60 = vld [vmem:[#allocation31_spill] sm:$0xff]  ;;  %v7693_v38 = vld [vmem:[#allocation65_spill] sm:$0xff]  ;;  %v7694_v39 = vld [vmem:[#allocation66_spill] sm:$0xff] }
  0xab   :  { %5209 = vmatprep.subr.bf16.mxu0 %v6897_v0  ;;  %v6911_v63 = vpack.c.bf16 %v7663_v26, %v7661_v40  ;;  %v5250_v29 = vpack.c.bf16 %v6239_v55, %v6213_v42  ;;  %v5252_v36 = vpack.c.bf16 %v6278_v62, %v6273_v6  ;;  %v5254_v32 = vpack.c.bf16 %v6289_v16, %v6284_v3  ;;  %v7670_v41 = vld [vmem:[#allocation23_spill] sm:$0xff]  ;;  %v7673_v62 = vld [vmem:[#allocation53_spill] sm:$0xff] }
  0xac   :  { %v6918_v48 = vpack.c.bf16 %v7667_v30, %v7665_v31  ;;  %v5256_v55 = vpack.c.bf16 %v6312_v1, %v6294_v23  ;;  %v5258_v6 = vpack.c.bf16 %v6333_v19, %v6317_v35  ;;  %v5260_v42 = vpack.c.bf16 %v6390_v44, %v6375_v59  ;;  %v7671_v35 = vld [vmem:[#allocation48_spill] sm:$0xff]  ;;  %v7672_v23 = vld [vmem:[#allocation49_spill] sm:$0xff]  ;;  %v7676_v44 = vld [vmem:[#allocation27_spill] sm:$0xff] }
  0xad   :  { %5247 = vmatpush3.bf16.msra.mxu1 %v5246_v24  ;;  %v5262_v3 = vpack.c.bf16 %v6417_v14, %v6412_v46  ;;  %v5264_v16 = vpack.c.bf16 %v6461_v18, %v6438_v58  ;;  %v5266_v19 = vpack.c.bf16 %v7672_v23, %v7671_v35  ;;  %v5268_v1 = vpack.c.bf16 %v7673_v62, %v6525_v5  ;;  %v7674_v46 = vld [vmem:[#allocation54_spill] sm:$0xff]  ;;  %v7675_v14 = vld [vmem:[#allocation55_spill] sm:$0xff]  ;;  %v2363_v35 = vld [vmem:[%s7267_s3 + $0x8] sm:$0xff] }
  0xae   :  { %5211 = vmatpush3.bf16.msra.mxu0 %v6904_v34  ;;  %5281 = vmatprep.subr.bf16.mxu1 %v6744_v11  ;;  %v5270_v18 = vpack.c.bf16 %v7675_v14, %v7674_v46  ;;  %v5272_v58 = vpack.c.bf16 %v6563_v56, %v6558_v54  ;;  %v5274_v5 = vpack.c.bf16 %v6575_v33, %v6570_v20  ;;  %v7677_v20 = vld [vmem:[#allocation20_spill] sm:$0xff]  ;;  %v7678_v33 = vld [vmem:[#allocation22_spill] sm:$0xff]  ;;  %v1893_v47 = vlaneseq }
  0xaf   :  { %5213 = vmatprep.subr.bf16.mxu0 %v6911_v63  ;;  %v5276_v59 = vpack.c.bf16 %v6589_v49, %v6580_v27  ;;  %v5278_v54 = vpack.c.bf16 %v6603_v52, %v6594_v13  ;;  %v7679_v27 = vld [vmem:[#allocation26_spill] sm:$0xff]  ;;  %v7681_v13 = vld [vmem:[#allocation29_spill] sm:$0xff]  ;;  %v7683_v52 = vld [vmem:[#allocation19_spill] sm:$0xff]  ;;  %v5559_v23 = vmov 0.0|0.0   ;;  %v2379_v62 = vand.u32 4294901760, %v2363_v35 }
  0xb0   :  { %1359 = vmatmul.mubr.f32.vlgmr.msra.gmra.mrb[6].mxu1 %v7598_v12  ;;  %v7680_v56 = vld [vmem:[#allocation18_spill] sm:$0xff]  ;;  %v7682_v49 = vld [vmem:[#allocation21_spill] sm:$0xff]  ;;  %v1894_v21 = vand.u32 127, %v1893_v47  ;;  %v7024_v37 = vshrl.u32 %v1893_v47, 7 }
  0xb1   :  { %5283 = vmatpush3.bf16.msra.mxu1 %v6761_v51  ;;  %1601 = vmatprep.mubr.f32.mxu1 %v7668_v17 }
  0xb2   :  { %5215 = vmatpush3.bf16.msra.mxu0 %v6918_v48  ;;  %5285 = vmatprep.subr.bf16.mxu1 %v6768_v45 }
  0xb3   :  { %5249 = vmatprep.subr.bf16.mxu0 %v5248_v7 }
  0xb5   :  { %1127 = vmatmul.mubr.f32.vlgmr.msra.gmra.mrb[6].mxu0 %v7669_v60  ;;  %5287 = vmatpush3.bf16.msra.mxu1 %v6790_v15 }
  0xb6   :  { %5251 = vmatpush3.bf16.msra.mxu0 %v5250_v29  ;;  %1494 = vmatprep.mubr.f32.mxu0 %v7670_v41 }
  0xb7   :  { %5253 = vmatprep.subr.bf16.mxu0 %v5252_v36  ;;  %5289 = vmatprep.subr.bf16.mxu1 %v6796_v25 }
  0xb9   :  { %5291 = vmatpush3.bf16.msra.mxu1 %v6817_v4 }
  0xba   :  { %5255 = vmatpush3.bf16.msra.mxu0 %v5254_v32  ;;  %5293 = vmatprep.subr.bf16.mxu1 %v6831_v22 }
  0xbb   :  { %5257 = vmatprep.subr.bf16.mxu0 %v5256_v55 }
  0xbd   :  { %5295 = vmatpush3.bf16.msra.mxu1 %v6843_v8 }
  0xbe   :  { %5259 = vmatpush3.bf16.msra.mxu0 %v5258_v6  ;;  %5297 = vmatprep.subr.bf16.mxu1 %v6850_v50 }
  0xbf   :  { %5261 = vmatprep.subr.bf16.mxu0 %v5260_v42 }
  0xc1   :  { %5299 = vmatpush3.bf16.msra.mxu1 %v6870_v28 }
  0xc2   :  { %5263 = vmatpush3.bf16.msra.mxu0 %v5262_v3  ;;  %5301 = vmatprep.subr.bf16.mxu1 %v6876_v9 }
  0xc3   :  { %5265 = vmatprep.subr.bf16.mxu0 %v5264_v16  ;;  %v2362_v16 = vld [vmem:[%s7267_s3] sm:$0xff] }
  0xc5   :  { %5303 = vmatpush3.bf16.msra.mxu1 %v6890_v61 }
  0xc6   :  { %5267 = vmatpush3.bf16.msra.mxu0 %v5266_v19  ;;  %5305 = vmatprep.subr.bf16.mxu1 %v6897_v0  ;;  %v2376_v19 = vand.u32 4294901760, %v2362_v16 }
  0xc7   :  { %5269 = vmatprep.subr.bf16.mxu0 %v5268_v1 }
  0xc8   :  { %v7046_v1 = vpack.c.bf16 %v2379_v62, %v2376_v19  ;;  %v2454_v47 = vsub.f32 %v2362_v16, %v2376_v19 }
  0xc9   :  { %5307 = vmatpush3.bf16.msra.mxu1 %v6904_v34 }
  0xca   :  { %5271 = vmatpush3.bf16.msra.mxu0 %v5270_v18  ;;  %5309 = vmatprep.subr.bf16.mxu1 %v6911_v63 }
  0xcb   :  { %5273 = vmatprep.subr.bf16.mxu0 %v5272_v58 }
  0xcd   :  { %5311 = vmatpush3.bf16.msra.mxu1 %v6918_v48 }
  0xce   :  { %5275 = vmatpush3.bf16.msra.mxu0 %v5274_v5  ;;  %5345 = vmatprep.subr.bf16.mxu1 %v6744_v11  ;;  %v7684_v11 = vld [vmem:[#allocation56_spill] sm:$0xff] }
  0xcf   :  { %5277 = vmatprep.subr.bf16.mxu0 %v5276_v59 }
  0xd0   :  { %1605 = vmatmul.mubr.f32.vlgmr.msra.gmra.mrb[8].mxu1 %v7676_v44 }
  0xd1   :  { %5347 = vmatpush3.bf16.msra.mxu1 %v6761_v51  ;;  %1875 = vmatprep.mubr.f32.mxu1 %v7678_v33  ;;  %v7685_v51 = vld [vmem:[#allocation57_spill] sm:$0xff] }
  0xd2   :  { %5279 = vmatpush3.bf16.msra.mxu0 %v5278_v54  ;;  %5349 = vmatprep.subr.bf16.mxu1 %v6768_v45  ;;  %v7686_v45 = vld [vmem:[#allocation58_spill] sm:$0xff] }
  0xd3   :  { %5313 = vmatprep.subr.bf16.mxu0 %v7677_v20  ;;  %v2840_v20 = vld [vmem:[%s7269_s5] sm:$0xff] }
  0xd5   :  { %1497 = vmatmul.mubr.f32.vlgmr.msra.gmra.mrb[8].mxu0 %v7679_v27  ;;  %5351 = vmatpush3.bf16.msra.mxu1 %v6790_v15  ;;  %v7687_v15 = vld [vmem:[#allocation59_spill] sm:$0xff]  ;;  %v2853_v27 = vand.u32 4294901760, %v2840_v20 }
  0xd6   :  { %5315 = vmatpush3.bf16.msra.mxu0 %v7680_v56  ;;  %1771 = vmatprep.mubr.f32.mxu0 %v7678_v33  ;;  %v2841_v33 = vld [vmem:[%s7269_s5 + $0x8] sm:$0xff] }
  0xd7   :  { %5317 = vmatprep.subr.bf16.mxu0 %v7681_v13  ;;  %5353 = vmatprep.subr.bf16.mxu1 %v6796_v25  ;;  %v7688_v25 = vld [vmem:[#allocation60_spill] sm:$0xff]  ;;  %v2856_v56 = vand.u32 4294901760, %v2841_v33 }
  0xd9   :  { %5355 = vmatpush3.bf16.msra.mxu1 %v6817_v4  ;;  %v7689_v4 = vld [vmem:[#allocation61_spill] sm:$0xff]  ;;  %v7060_v13 = vpack.c.bf16 %v2856_v56, %v2853_v27 }
  0xda   :  { %5319 = vmatpush3.bf16.msra.mxu0 %v7682_v49  ;;  %5357 = vmatprep.subr.bf16.mxu1 %v6831_v22  ;;  %v7690_v22 = vld [vmem:[#allocation62_spill] sm:$0xff]  ;;  %v7062_v49 = vsub.f32 %v2840_v20, %v2853_v27 }
  0xdb   :  { %5321 = vmatprep.subr.bf16.mxu0 %v7683_v52  ;;  %v7064_v52 = vsub.f32 %v2841_v33, %v2856_v56 }
  0xdd   :  { %5359 = vmatpush3.bf16.msra.mxu1 %v6843_v8  ;;  %v1883_v8 = vld [vmem:[%s7265_s1] sm:$0xf] }
  0xde   :  { %5323 = vmatpush3.bf16.msra.mxu0 %v7684_v11  ;;  %5361 = vmatprep.subr.bf16.mxu1 %v6850_v50  ;;  %v7691_v50 = vld [vmem:[#allocation63_spill] sm:$0xff]  ;;  %v2932_v11 = vand.u32 4294901760, %v7062_v49 }
  0xdf   :  { %5325 = vmatprep.subr.bf16.mxu0 %v7685_v51  ;;  %v2939_v51 = vand.u32 4294901760, %v7064_v52 }
  0xe1   :  { %5363 = vmatpush3.bf16.msra.mxu1 %v6870_v28  ;;  %v1908_v28 = vsel %vm47_vm0, %v1883_v8, 0 }
  0xe2   :  { %5327 = vmatpush3.bf16.msra.mxu0 %v7686_v45  ;;  %5365 = vmatprep.subr.bf16.mxu1 %v6876_v9  ;;  %v7692_v9 = vld [vmem:[#allocation64_spill] sm:$0xff]  ;;  %v2933_v45 = vsub.f32 %v7062_v49, %v2932_v11 }
  0xe3   :  { %5329 = vmatprep.subr.bf16.mxu0 %v7687_v15  ;;  %v2940_v15 = vsub.f32 %v7064_v52, %v2939_v51 }
  0xe5   :  { %5367 = vmatpush3.bf16.msra.mxu1 %v6890_v61  ;;  %v1911_v61 = vand.u32 4294901760, %v1908_v28 }
  0xe6   :  { %5331 = vmatpush3.bf16.msra.mxu0 %v7688_v25  ;;  %5369 = vmatprep.subr.bf16.mxu1 %v6897_v0  ;;  %v5557_v0 = vmov 0.0   ;;  %v2934_v25 = vand.u32 4294901760, %v2933_v45 }
  0xe7   :  { %5333 = vmatprep.subr.bf16.mxu0 %v7689_v4  ;;  %v2941_v4 = vand.u32 4294901760, %v2940_v15 }
  0xe9   :  { %5371 = vmatpush3.bf16.msra.mxu1 %v6904_v34  ;;  %v1897_v34 = vsub.s32 %v1894_v21, %v7024_v37  ;;  %v2461_v21 = vsub.f32 %v2363_v35, %v2379_v62 }
  0xea   :  { %5335 = vmatpush3.bf16.msra.mxu0 %v7690_v22  ;;  %5373 = vmatprep.subr.bf16.mxu1 %v6911_v63  ;;  %v1988_v63 = vsub.f32 %v1908_v28, %v1911_v61  ;;  %v7072_v22 = vpack.c.bf16 %v2941_v4, %v2934_v25 }
  0xeb   :  { %5337 = vmatprep.subr.bf16.mxu0 %v7691_v50  ;;  %v5401_v50 = vpack.c.bf16 %v7064_v52, %v7062_v49  ;;  %v4404_v49 = vld [vmem:[%s7266_s2] ss:$0 sm:$0xff] }
  0xec   :  { %v1989_v31 = vand.u32 4294901760, %v1988_v63 }
  0xed   :  { %5375 = vmatpush3.bf16.msra.mxu1 %v6918_v48 }
  0xee   :  { %5339 = vmatpush3.bf16.msra.mxu0 %v7692_v9  ;;  %4878 = vmatprep.subr.mxu1 %v5557_v0  ;;  %v1990_v48 = vsub.f32 %v1988_v63, %v1989_v31 }
  0xef   :  { %5341 = vmatprep.subr.bf16.mxu0 %v7693_v38 }
  0xf0   :  { %1877 = vmatmul.mubr.f32.vlgmr.msra.gmra.mrb[10].mxu1 %v7598_v12  ;;  %v1991_v32 = vand.u32 4294901760, %v1990_v48 }
  0xf1   :  { %4879 = vmatpush3.msra.mxu1 %v1911_v61  ;;  %4880 = vmatprep.mubr.msk.f32.mxu1 %vm5558_vm2, %v5557_v0 }
  0xf2   :  { %5343 = vmatpush3.bf16.msra.mxu0 %v7694_v39  ;;  %4883 = vmatprep.subr.mxu1 %v5557_v0 }
  0xf3   :  { %4893 = vmatprep.subr.mxu0 %v5557_v0 }
  0xf5   :  { %1773 = vmatmul.mubr.f32.vlgmr.msra.gmra.mrb[10].mxu0 %v7598_v12 }
  0xf6   :  { %4894 = vmatpush3.msra.mxu0 %v1911_v61  ;;  %4895 = vmatprep.mubr.msk.f32.mxu0 %vm5558_vm2, %v5557_v0 }
  0xf7   :  { %4898 = vmatprep.subr.mxu0 %v5557_v0 }
 0x10b   :  { %v52_v57 = vpop.xlane.xlu0 %51 }
 0x10c   :  { %v58_v2 = vmul.f32 0.00390625, %v52_v57 }
 0x10e   :  { %v1898_v53 = vrot.slane %v58_v2, %v1897_v34  ;;  %v2455_v2 = vand.u32 4294901760, %v2454_v47 }
 0x10f   :  { %v57_v40 = vpop.xlane.xlu0 %56 }
 0x110   :  { %v59_v26 = vmul.f32 0.00390625, %v57_v40  ;;  %v2462_v40 = vand.u32 4294901760, %v2461_v21 }
 0x112   :  { %v1902_v12 = vrot.slane %v59_v26, %v1897_v34  ;;  %v5389_v16 = vpack.c.bf16 %v2462_v40, %v2455_v2 }
 0x114   :  { %v1903_v24 = vsel %vm120_vm1, %v1902_v12, %v1898_v53  ;;  %v2463_v12 = vsub.f32 %v2461_v21, %v2462_v40 }
 0x115   :  { %v1905_v43 = vsel %vm1904_vm3, %v1903_v24, 0 }
 0x116   :  { %v1976_v10 = vand.u32 4294901760, %v1905_v43 }
 0x118   :  { %v1977_v30 = vsub.f32 %v1905_v43, %v1976_v10  ;;  %v4477_v29 = vpop.f32.mrb[0].mxu1 }
 0x119   :  { %v4478_v36 = vpop.f32.mrb[1].mxu1 }
 0x11a   :  { %v1978_v7 = vand.u32 4294901760, %v1977_v30  ;;  %v4479_v60 = vadd.f32 %v4478_v36, %v4477_v29 }
 0x11c   :  { %v1979_v17 = vsub.f32 %v1977_v30, %v1978_v7  ;;  %4896 = vmatmul.mubr.f32.vlgmr.msra.gmra.mrb[12].mxu0 %v1978_v7 }
 0x11d   :  { %4899 = vmatpush3.msra.mxu0 %v1989_v31  ;;  %4900 = vmatprep.mubr.msk.f32.mxu0 %vm5558_vm2, %v5557_v0  ;;  %v7077_v31 = vpack.c.bf16 %v2939_v51, %v2932_v11 }
 0x11e   :  { %v4442_v41 = vpop.f32.mrb[0].mxu0  ;;  %v1980_v55 = vand.u32 4294901760, %v1979_v17  ;;  %4903 = vmatprep.subr.mxu0 %v5557_v0  ;;  %v5383_v17 = vpack.c.bf16 %v2461_v21, %v2454_v47 }
 0x11f   :  { %v4443_v6 = vpop.f32.mrb[1].mxu0 }
 0x120   :  { %v4444_v42 = vadd.f32 %v4443_v6, %v4442_v41  ;;  %4881 = vmatmul.mubr.f32.vlgmr.msra.gmra.mrb[12].mxu1 %v1980_v55 }
 0x121   :  { %4884 = vmatpush3.msra.mxu1 %v1991_v32  ;;  %4885 = vmatprep.mubr.msk.f32.mxu1 %vm5558_vm2, %v5557_v0 }
 0x122   :  { %v466_v3 = vadd.f32 %v4479_v60, %v4444_v42  ;;  %4888 = vmatprep.subr.mxu1 %v5557_v0 }
 0x124   :  { %4901 = vmatmul.mubr.f32.vlgmr.msra.gmra.mrb[12].mxu0 %v1976_v10 }
 0x125   :  { %4904 = vmatpush3.msra.mxu0 %v1911_v61  ;;  %4905 = vmatprep.mubr.msk.f32.mxu0 %vm5558_vm2, %v5557_v0 }
 0x126   :  { %5394 = vmatprep.subr.bf16.mxu0 %v5559_v23 }
 0x128   :  { %4886 = vmatmul.mubr.f32.vlgmr.msra.gmra.mrb[12].mxu1 %v1976_v10 }
 0x129   :  { %4889 = vmatpush3.msra.mxu1 %v1988_v63  ;;  %4890 = vmatprep.mubr.msk.f32.mxu1 %vm5558_vm2, %v5557_v0  ;;  %v2456_v63 = vsub.f32 %v2454_v47, %v2455_v2 }
 0x12a   :  { %5376 = vmatprep.subr.bf16.mxu1 %v5559_v23 }
 0x12c   :  { %4906 = vmatmul.mubr.f32.vlgmr.msra.gmra.mrb[12].mxu0 %v1976_v10  ;;  %v2457_v10 = vand.u32 4294901760, %v2456_v63 }
 0x12d   :  { %4954 = vmatprep.mubr.msk.f32.mxu0 %vm5558_vm2, %v5557_v0  ;;  %5396 = vmatpush3.bf16.msra.mxu0 %v7060_v13 }
 0x12e   :  { %5397 = vmatprep.subr.bf16.mxu0 %v5559_v23 }
 0x130   :  { %4891 = vmatmul.mubr.f32.vlgmr.msra.gmra.mrb[12].mxu1 %v1977_v30  ;;  %v2464_v30 = vand.u32 4294901760, %v2463_v12 }
 0x131   :  { %5378 = vmatpush3.bf16.msra.mxu1 %v7046_v1  ;;  %4912 = vmatprep.mubr.msk.f32.mxu1 %vm5558_vm2, %v5557_v0 }
 0x132   :  { %5379 = vmatprep.subr.bf16.mxu1 %v5559_v23  ;;  %v5380_v29 = vpack.c.bf16 %v2464_v30, %v2457_v10 }
 0x139   :  { %v4547_v46 = vpop.f32.mrb[2].mxu1 }
 0x13a   :  { %v4548_v14 = vpop.f32.mrb[3].mxu1 }
 0x13b   :  { %v4549_v18 = vadd.f32 %v4548_v14, %v4547_v46 }
 0x13e   :  { %v4512_v58 = vpop.f32.mrb[2].mxu0 }
 0x13f   :  { %v4513_v5 = vpop.f32.mrb[3].mxu0 }
 0x140   :  { %v4514_v59 = vadd.f32 %v4513_v5, %v4512_v58 }
 0x142   :  { %v604_v54 = vadd.f32 %v4514_v59, %v466_v3 }
 0x144   :  { %v712_v44 = vadd.f32 %v4549_v18, %v604_v54 }
 0x160   :  { %v4617_v8 = vpop.f32.mrb[4].mxu1 }
 0x161   :  { %v4618_v28 = vpop.f32.mrb[5].mxu1 }
 0x162   :  { %v4619_v9 = vadd.f32 %v4618_v28, %v4617_v8 }
 0x164   :  { %v4582_v38 = vpop.f32.mrb[4].mxu0 }
 0x165   :  { %v4583_v61 = vpop.f32.mrb[5].mxu0 }
 0x166   :  { %v4584_v39 = vadd.f32 %v4583_v61, %v4582_v38  ;;  %v3319_v38 = vld [vmem:[%s7271_s7 + $0x10] sm:$0xff] }
 0x168   :  { %v880_v57 = vadd.f32 %v4584_v39, %v712_v44  ;;  %v3330_v39 = vand.u32 4294901760, %v3319_v38 }
 0x16a   :  { %v984_v34 = vadd.f32 %v4619_v9, %v880_v57 }
 0x16c   :  { %v987_v53 = vmul.f32 0.015625, %v984_v34 }
 0x16e   :  { %v2373_v26 = vsel %vm2371_vm4, %v987_v53, 0  ;;  %v7140_v53 = vsub.f32 %v3319_v38, %v3330_v39 }
 0x16f   :  { %v2442_v24 = vand.u32 4294901760, %v2373_v26 }
 0x171   :  { %v2443_v43 = vsub.f32 %v2373_v26, %v2442_v24 }
 0x173   :  { %v2444_v48 = vand.u32 4294901760, %v2443_v43 }
 0x175   :  { %v2445_v7 = vsub.f32 %v2443_v43, %v2444_v48 }
 0x177   :  { %v2446_v36 = vand.u32 4294901760, %v2445_v7  ;;  %v3424_v7 = vand.u32 4294901760, %v7140_v53 }
 0x179   :  { %4913 = vmatmul.mubr.f32.vlgmr.msra.gmra.mrb[14].mxu1 %v2446_v36 }
 0x17a   :  { %5381 = vmatpush3.bf16.msra.mxu1 %v5380_v29  ;;  %4919 = vmatprep.mubr.msk.f32.mxu1 %vm5558_vm2, %v5557_v0 }
 0x17b   :  { %5382 = vmatprep.subr.bf16.mxu1 %v5559_v23 }
 0x181   :  { %4920 = vmatmul.mubr.f32.vlgmr.msra.gmra.mrb[14].mxu1 %v2442_v24 }
 0x182   :  { %5384 = vmatpush3.bf16.msra.mxu1 %v5383_v17  ;;  %4926 = vmatprep.mubr.msk.f32.mxu1 %vm5558_vm2, %v5557_v0 }
 0x183   :  { %v4687_v60 = vpop.f32.mrb[6].mxu1  ;;  %5385 = vmatprep.subr.bf16.mxu1 %v5559_v23 }
 0x184   :  { %v4688_v32 = vpop.f32.mrb[7].mxu1 }
 0x185   :  { %v4689_v41 = vadd.f32 %v4688_v32, %v4687_v60  ;;  %v3425_v60 = vsub.f32 %v7140_v53, %v3424_v7 }
 0x188   :  { %v4652_v55 = vpop.f32.mrb[6].mxu0 }
 0x189   :  { %v4653_v6 = vpop.f32.mrb[7].mxu0  ;;  %4927 = vmatmul.mubr.f32.vlgmr.msra.gmra.mrb[14].mxu1 %v2443_v43 }
 0x18a   :  { %v4654_v42 = vadd.f32 %v4653_v6, %v4652_v55  ;;  %5387 = vmatpush3.bf16.msra.mxu1 %v7046_v1  ;;  %4933 = vmatprep.mubr.msk.f32.mxu1 %vm5558_vm2, %v5557_v0  ;;  %v3426_v6 = vand.u32 4294901760, %v3425_v60 }
 0x18b   :  { %5388 = vmatprep.subr.bf16.mxu1 %v5559_v23 }
 0x18c   :  { %v1361_v3 = vadd.f32 %v4689_v41, %v4654_v42 }
 0x191   :  { %4934 = vmatmul.mubr.f32.vlgmr.msra.gmra.mrb[14].mxu1 %v2444_v48 }
 0x192   :  { %5390 = vmatpush3.bf16.msra.mxu1 %v5389_v16  ;;  %4940 = vmatprep.mubr.msk.f32.mxu1 %vm5558_vm2, %v5557_v0  ;;  %v7159_v16 = vsub.s32 0, %v7024_v37 }
 0x193   :  { %5391 = vmatprep.subr.bf16.mxu1 %v5559_v23 }
 0x199   :  { %4941 = vmatmul.mubr.f32.vlgmr.msra.gmra.mrb[14].mxu1 %v2442_v24 }
 0x19a   :  { %5393 = vmatpush3.bf16.msra.mxu1 %v7046_v1  ;;  %4947 = vmatprep.mubr.msk.f32.mxu1 %vm5558_vm2, %v5557_v0 }
 0x1a1   :  { %4948 = vmatmul.mubr.f32.vlgmr.msra.gmra.mrb[14].mxu1 %v2442_v24 }
 0x1a2   :  { %3392 = vmatprep.mubr.f32.mxu1 %v5557_v0 }
 0x1a3   :  { %v4757_v35 = vpop.f32.mrb[8].mxu1 }
 0x1a4   :  { %v4758_v19 = vpop.f32.mrb[9].mxu1 }
 0x1a5   :  { %v4759_v62 = vadd.f32 %v4758_v19, %v4757_v35 }
 0x1a8   :  { %v4722_v46 = vpop.f32.mrb[8].mxu0 }
 0x1a9   :  { %v4723_v14 = vpop.f32.mrb[9].mxu0 }
 0x1aa   :  { %v4724_v18 = vadd.f32 %v4723_v14, %v4722_v46 }
 0x1ac   :  { %v1499_v58 = vadd.f32 %v4724_v18, %v1361_v3 }
 0x1ae   :  { %v1607_v5 = vadd.f32 %v4759_v62, %v1499_v58  ;;  %v7166_v62 = vsub.s32 1, %v7024_v37 }
 0x1c3   :  { %v4827_v59 = vpop.f32.mrb[10].mxu1 }
 0x1c4   :  { %v4828_v54 = vpop.f32.mrb[11].mxu1 }
 0x1c5   :  { %v4829_v44 = vadd.f32 %v4828_v54, %v4827_v59  ;;  %v3816_v59 = vld [vmem:[%s7273_s9 + $0x8] sm:$0xff]  ;;  %v3818_v54 = vld [vmem:[%s7273_s9 + $0x18] sm:$0xff] }
 0x1c8   :  { %v4792_v20 = vpop.f32.mrb[10].mxu0 }
 0x1c9   :  { %v4793_v33 = vpop.f32.mrb[11].mxu0 }
 0x1ca   :  { %v4794_v1 = vadd.f32 %v4793_v33, %v4792_v20  ;;  %v3822_v20 = vand.u32 4294901760, %v3816_v59  ;;  %v3826_v33 = vand.u32 4294901760, %v3818_v54 }
 0x1cc   :  { %v1775_v27 = vadd.f32 %v4794_v1, %v1607_v5  ;;  %v3817_v1 = vld [vmem:[%s7273_s9 + $0x10] sm:$0xff] }
 0x1ce   :  { %v1879_v56 = vadd.f32 %v4829_v44, %v1775_v27  ;;  %v3815_v44 = vld [vmem:[%s7273_s9] sm:$0xff] }
 0x1cf   :  { %v3824_v27 = vand.u32 4294901760, %v3815_v44 }
 0x1d0   :  { %v1882_v11 = vmul.f32 0.015625, %v1879_v56  ;;  %v3828_v56 = vand.u32 4294901760, %v3817_v1 }
 0x1d2   :  { %v2850_v51 = vsel %vm2371_vm4, %v1882_v11, 0  ;;  %v7186_v11 = vpack.c.bf16 %v3826_v33, %v3822_v20 }
 0x1d3   :  { %v2919_v45 = vand.u32 4294901760, %v2850_v51 }
 0x1d5   :  { %v2920_v15 = vsub.f32 %v2850_v51, %v2919_v45  ;;  %v7188_v51 = vsub.f32 %v3816_v59, %v3822_v20 }
 0x1d7   :  { %v2921_v25 = vand.u32 4294901760, %v2920_v15 }
 0x1d9   :  { %v2922_v4 = vsub.f32 %v2920_v15, %v2921_v25 }
 0x1db   :  { %v2923_v8 = vand.u32 4294901760, %v2922_v4  ;;  %v7196_v4 = vsub.f32 %v3817_v1, %v3828_v56 }
 0x1dd   :  { %4955 = vmatmul.mubr.f32.vlgmr.msra.gmra.mrb[14].mxu0 %v2923_v8  ;;  %v3904_v8 = vand.u32 4294901760, %v7188_v51 }
 0x1de   :  { %5399 = vmatpush3.bf16.msra.mxu0 %v7072_v22  ;;  %4961 = vmatprep.mubr.msk.f32.mxu0 %vm5558_vm2, %v5557_v0  ;;  %v3318_v22 = vld [vmem:[%s7271_s7 + $0x8] sm:$0xff] }
 0x1df   :  { %5400 = vmatprep.subr.bf16.mxu0 %v5559_v23  ;;  %v3324_v28 = vand.u32 4294901760, %v3318_v22 }
 0x1e1   :  { %v7144_v12 = vsub.f32 %v3318_v22, %v3324_v28 }
 0x1e3   :  { %v3406_v10 = vand.u32 4294901760, %v7144_v12 }
 0x1e5   :  { %4962 = vmatmul.mubr.f32.vlgmr.msra.gmra.mrb[14].mxu0 %v2919_v45  ;;  %v3407_v29 = vsub.f32 %v7144_v12, %v3406_v10 }
 0x1e6   :  { %5402 = vmatpush3.bf16.msra.mxu0 %v5401_v50  ;;  %4968 = vmatprep.mubr.msk.f32.mxu0 %vm5558_vm2, %v5557_v0 }
 0x1e7   :  { %5403 = vmatprep.subr.bf16.mxu0 %v5559_v23  ;;  %v3408_v32 = vand.u32 4294901760, %v3407_v29 }
 0x1ed   :  { %4969 = vmatmul.mubr.f32.vlgmr.msra.gmra.mrb[14].mxu0 %v2920_v15  ;;  %v7192_v15 = vsub.f32 %v3815_v44, %v3824_v27  ;;  %v5560_v44 = vmov 1966171168  }
 0x1ee   :  { %5405 = vmatpush3.bf16.msra.mxu0 %v7060_v13  ;;  %4975 = vmatprep.mubr.msk.f32.mxu0 %vm5558_vm2, %v5557_v0  ;;  %v4333_v20 = vunpack.c.l.s4 %v5560_v44 }
 0x1ef   :  { %5406 = vmatprep.subr.bf16.mxu0 %v5559_v23 }
 0x1f5   :  { %4976 = vmatmul.mubr.f32.vlgmr.msra.gmra.mrb[14].mxu0 %v2921_v25  ;;  %v7194_v25 = vpack.c.bf16 %v3828_v56, %v3824_v27 }
 0x1f6   :  { %5408 = vmatpush3.bf16.msra.mxu0 %v7077_v31  ;;  %4982 = vmatprep.mubr.msk.f32.mxu0 %vm5558_vm2, %v5557_v0 }
 0x1f7   :  { %5409 = vmatprep.subr.bf16.mxu0 %v5559_v23  ;;  %v3320_v23 = vld [vmem:[%s7271_s7 + $0x18] sm:$0xff] }
 0x1f8   :  { %v3328_v9 = vand.u32 4294901760, %v3320_v23 }
 0x1fa   :  { %v7134_v21 = vpack.c.bf16 %v3328_v9, %v3324_v28  ;;  %v7146_v24 = vsub.f32 %v3320_v23, %v3328_v9  ;;  %v4406_v28 = vld [vmem:[%s7268_s4] ss:$0 sm:$0xff] }
 0x1fc   :  { %5413 = vmatprep.subr.bf16.mxu1 %v7134_v21  ;;  %v3418_v30 = vand.u32 4294901760, %v7146_v24  ;;  %v5420_v35 = vpack.c.bf16 %v7146_v24, %v7144_v12 }
 0x1fd   :  { %4983 = vmatmul.mubr.f32.vlgmr.msra.gmra.mrb[14].mxu0 %v2919_v45 }
 0x1fe   :  { %5411 = vmatpush3.bf16.msra.mxu0 %v7060_v13  ;;  %4989 = vmatprep.mubr.msk.f32.mxu0 %vm5558_vm2, %v5557_v0  ;;  %v3317_v13 = vld [vmem:[%s7271_s7] sm:$0xff]  ;;  %v3419_v36 = vsub.f32 %v7146_v24, %v3418_v30  ;;  %v7170_v58 = vpack.c.bf16 %v3418_v30, %v3406_v10 }
 0x1ff   :  { %v2352_v52 = vpop.f32.mrb[12].mxu0  ;;  %v3326_v61 = vand.u32 4294901760, %v3317_v13  ;;  %5437 = vmatprep.subr.bf16.mxu0 %v7186_v11 }
 0x200   :  { %v4907_v50 = vpop.f32.mrb[13].mxu0  ;;  %v3420_v41 = vand.u32 4294901760, %v3419_v36 }
 0x201   :  { %v7136_v57 = vsub.f32 %v3317_v13, %v3326_v61  ;;  %v7138_v40 = vpack.c.bf16 %v3330_v39, %v3326_v61 }
 0x202   :  { %v5416_v42 = vpack.c.bf16 %v3420_v41, %v3408_v32 }
 0x203   :  { %v2132_v47 = vpop.f32.mrb[12].mxu1  ;;  %5415 = vmatpush1.bf16.msra.mxu1 %v7138_v40  ;;  %v3412_v48 = vand.u32 4294901760, %v7136_v57  ;;  %v5422_v19 = vpack.c.bf16 %v7140_v53, %v7136_v57 }
 0x204   :  { %v5460_v34 = vadd.f32 %v4404_v49, %v2132_v47  ;;  %v4892_v2 = vpop.f32.mrb[13].mxu1  ;;  %5417 = vmatprep.subr.bf16.mxu1 %v5416_v42  ;;  %v3910_v47 = vand.u32 4294901760, %v7192_v15 }
 0x205   :  { %4990 = vmatmul.mubr.f32.vlgmr.msra.gmra.mrb[14].mxu0 %v2919_v45  ;;  %v3413_v17 = vsub.f32 %v7136_v57, %v3412_v48  ;;  %v7172_v5 = vpack.c.bf16 %v3424_v7, %v3412_v48  ;;  %v7190_v45 = vsub.f32 %v3818_v54, %v3826_v33  ;;  %v5446_v7 = vpack.c.bf16 %v7196_v4, %v7192_v15  ;;  %v4408_v57 = vld [vmem:[%s7270_s6] ss:$0 sm:$0xff]  ;;  %s5561_s6 = smov [#allocation2]  }
 0x206   :  { %3890 = vmatprep.mubr.f32.mxu0 %v5557_v0  ;;  %v5461_v26 = vadd.f32 %v5460_v34, %v2352_v52  ;;  %5439 = vmatpush1.bf16.msra.mxu0 %v7194_v25  ;;  %v3905_v52 = vsub.f32 %v7188_v51, %v3904_v8  ;;  %v3922_v34 = vand.u32 4294901760, %v7196_v4  ;;  %v4334_v33 = vunpack.c.0.s8 %v4333_v20  ;;  %s4393_s28 = sshll.u32 %s5561_s6, 4  ;;  %s4394_s28 = int_to_ptr.vmem [resolvable:$true] %s4393_s28 }
 0x207   :  { %v3414_v55 = vand.u32 4294901760, %v3413_v17  ;;  %v3916_v49 = vand.u32 4294901760, %v7190_v45  ;;  %v5444_v2 = vpack.c.bf16 %v7190_v45, %v7188_v51  ;;  %s5533_s29 = scalar_lea.vmem %s4394_s28, 256  ;;  %p5538_p1 = scmp.lt.s32.totalorder %s4394_s28, %s4394_s28 }
 0x208   :  { %v4405_v63 = vmul.f32 -1.442695, %v5461_v26  ;;  %v3906_v23 = vand.u32 4294901760, %v3905_v52  ;;  %v3911_v26 = vsub.f32 %v7192_v15, %v3910_v47  ;;  %v5454_v41 = vpack.c.bf16 %v3922_v34, %v3910_v47  ;;  %p5534_p0 = scmp.ne.s32.totalorder %s4394_s28, %s5533_s29  ;;  %p5539_p2 = scmp.lt.s32.totalorder %s5533_s29, %s5533_s29 }
 0x209   :  { %v7156_v3 = vpack.c.bf16 %v3426_v6, %v3414_v55  ;;  %v3917_v22 = vsub.f32 %v7190_v45, %v3916_v49  ;;  %v5452_v29 = vpack.c.bf16 %v3916_v49, %v3904_v8  ;;  %v4337_v45 = vsub.s32 %v4334_v33, %v7024_v37 }
 0x20a   :  { %5521 = vpow2.f32 %v4405_v63  ;;  %v3923_v63 = vsub.f32 %v7196_v4, %v3922_v34  ;;  %p5540_p3 = por %p5539_p2, %p5538_p1 }
 0x20b   :  { %v3918_v13 = vand.u32 4294901760, %v3917_v22 }
 0x20c   :  { %p5541_p4 = pnand %p5540_p3, %p5534_p0 }
 0x20d   :  { %v5440_v50 = vpack.c.bf16 %v3918_v13, %v3906_v23 }
 0x20f   :  { %5441 = vmatprep.subr.bf16.mxu0 %v5440_v50 }
 0x214   :  { %v5522_v43 = vpop.eup %5521 }
 0x215   :  { %v2359_v31 = vadd.f32 1.0, %v5522_v43  ;;  %v3912_v43 = vand.u32 4294901760, %v3911_v26 }
 0x217   :  { %5523 = vrcp.f32 %v2359_v31  ;;  %v3924_v31 = vand.u32 4294901760, %v3923_v63 }
 0x219   :  { %v5442_v10 = vpack.c.bf16 %v3924_v31, %v3912_v43 }
 0x221   :  { %v5524_v46 = vpop.eup %5523 }
 0x222   :  { %v4318_v14 = vrot.slane %v5524_v46, %v7159_v16  ;;  %v4325_v18 = vrot.slane %v5524_v46, %v7166_v62 }
 0x224   :  { %4320 = vbcast.lane.b32.xlu1 %v4318_v14, 256 }
 0x228   :  { %4327 = vbcast.lane.b32.xlu1 %v4325_v18, 256 }
 0x274   :  { %v2830_v9 = vpop.f32.mrb[14].mxu1 }
 0x275   :  { %v5462_v38 = vadd.f32 %v4406_v28, %v2830_v9  ;;  %v4949_v61 = vpop.f32.mrb[15].mxu1 }
 0x277   :  { %v4407_v39 = vmul.f32 -1.442695, %v5462_v38 }
 0x279   :  { %5525 = vpow2.f32 %v4407_v39 }
 0x283   :  { %v5526_v30 = vpop.eup %5525 }
 0x284   :  { %v2837_v48 = vadd.f32 1.0, %v5526_v30 }
 0x286   :  { %5527 = vrcp.f32 %v2837_v48 }
 0x290   :  { %v5528_v36 = vpop.eup %5527 }
 0x291   :  { %v3322_v17 = vsel %vm2371_vm4, %v5528_v36, 0 }
 0x292   :  { %v3393_v60 = vand.u32 4294901760, %v3322_v17 }
 0x294   :  { %v3394_v32 = vsub.f32 %v3322_v17, %v3393_v60 }
 0x296   :  { %v3395_v55 = vand.u32 4294901760, %v3394_v32 }
 0x298   :  { %v3396_v6 = vsub.f32 %v3394_v32, %v3395_v55 }
 0x29a   :  { %v3397_v42 = vand.u32 4294901760, %v3396_v6 }
 0x29c   :  { %3398 = vmatmul.mubr.f32.vlgmr.msra.gmra.mrb[16].mxu1 %v3397_v42 }
 0x29d   :  { %5419 = vmatpush1.bf16.msra.mxu1 %v7156_v3  ;;  %3488 = vmatprep.mubr.f32.mxu1 %v5557_v0 }
 0x29e   :  { %5421 = vmatprep.subr.bf16.mxu1 %v5420_v35 }
 0x2a4   :  { %3490 = vmatmul.mubr.f32.vlgmr.msra.gmra.mrb[16].mxu1 %v3393_v60 }
 0x2a5   :  { %5423 = vmatpush1.bf16.msra.mxu1 %v5422_v19  ;;  %3568 = vmatprep.mubr.f32.mxu1 %v5557_v0 }
 0x2a6   :  { %5425 = vmatprep.subr.bf16.mxu1 %v7134_v21 }
 0x2ac   :  { %3571 = vmatmul.mubr.f32.vlgmr.msra.gmra.mrb[16].mxu1 %v3394_v32 }
 0x2ad   :  { %5427 = vmatpush1.bf16.msra.mxu1 %v7138_v40  ;;  %3645 = vmatprep.mubr.f32.mxu1 %v5557_v0 }
 0x2ae   :  { %5429 = vmatprep.subr.bf16.mxu1 %v7170_v58 }
 0x2b4   :  { %3649 = vmatmul.mubr.f32.vlgmr.msra.gmra.mrb[16].mxu1 %v3395_v55 }
 0x2b5   :  { %5431 = vmatpush1.bf16.msra.mxu1 %v7172_v5  ;;  %3731 = vmatprep.mubr.f32.mxu1 %v5557_v0 }
 0x2b6   :  { %5433 = vmatprep.subr.bf16.mxu1 %v7134_v21 }
 0x2bc   :  { %3733 = vmatmul.mubr.f32.vlgmr.msra.gmra.mrb[16].mxu1 %v3393_v60 }
 0x2bd   :  { %5435 = vmatpush1.bf16.msra.mxu1 %v7138_v40  ;;  %3807 = vmatprep.mubr.f32.mxu1 %v5557_v0 }
 0x2c4   :  { %3809 = vmatmul.mubr.f32.vlgmr.msra.gmra.mrb[16].mxu1 %v3393_v60 }
 0x2d8   :  { %v3307_v53 = vpop.f32.mrb[14].mxu0 }
 0x2d9   :  { %v5463_v12 = vadd.f32 %v4408_v57, %v3307_v53  ;;  %v4991_v24 = vpop.f32.mrb[15].mxu0 }
 0x2db   :  { %v4409_v3 = vmul.f32 -1.442695, %v5463_v12 }
 0x2dd   :  { %5529 = vpow2.f32 %v4409_v3 }
 0x2e7   :  { %v5530_v35 = vpop.eup %5529 }
 0x2e8   :  { %v3314_v19 = vadd.f32 1.0, %v5530_v35 }
 0x2ea   :  { %5531 = vrcp.f32 %v3314_v19 }
 0x2f4   :  { %v5532_v46 = vpop.eup %5531 }
 0x2f5   :  { %v3820_v21 = vsel %vm2371_vm4, %v5532_v46, 0 }
 0x2f6   :  { %v3891_v14 = vand.u32 4294901760, %v3820_v21 }
 0x2f8   :  { %v3892_v40 = vsub.f32 %v3820_v21, %v3891_v14 }
 0x2fa   :  { %v3893_v18 = vand.u32 4294901760, %v3892_v40 }
 0x2fc   :  { %v3894_v58 = vsub.f32 %v3892_v40, %v3893_v18 }
 0x2fe   :  { %v3895_v5 = vand.u32 4294901760, %v3894_v58 }
 0x300   :  { %3896 = vmatmul.mubr.f32.vlgmr.msra.gmra.mrb[16].mxu0 %v3895_v5 }
 0x301   :  { %5443 = vmatpush1.bf16.msra.mxu0 %v5442_v10  ;;  %3986 = vmatprep.mubr.f32.mxu0 %v5557_v0 }
 0x302   :  { %5445 = vmatprep.subr.bf16.mxu0 %v5444_v2 }
 0x308   :  { %3988 = vmatmul.mubr.f32.vlgmr.msra.gmra.mrb[16].mxu0 %v3891_v14 }
 0x309   :  { %5447 = vmatpush1.bf16.msra.mxu0 %v5446_v7  ;;  %4066 = vmatprep.mubr.f32.mxu0 %v5557_v0 }
 0x30a   :  { %5449 = vmatprep.subr.bf16.mxu0 %v7186_v11 }
 0x310   :  { %4069 = vmatmul.mubr.f32.vlgmr.msra.gmra.mrb[16].mxu0 %v3892_v40 }
 0x311   :  { %5451 = vmatpush1.bf16.msra.mxu0 %v7194_v25  ;;  %4143 = vmatprep.mubr.f32.mxu0 %v5557_v0 }
 0x312   :  { %5453 = vmatprep.subr.bf16.mxu0 %v5452_v29 }
 0x318   :  { %4147 = vmatmul.mubr.f32.vlgmr.msra.gmra.mrb[16].mxu0 %v3893_v18 }
 0x319   :  { %5455 = vmatpush1.bf16.msra.mxu0 %v5454_v41  ;;  %4229 = vmatprep.mubr.f32.mxu0 %v5557_v0 }
 0x31a   :  { %5457 = vmatprep.subr.bf16.mxu0 %v7186_v11  ;;  %v4321_v11 = vpop.permute.xlu1 %4320 }
 0x31e   :  { %v4328_v28 = vpop.permute.xlu1 %4327 }
 0x320   :  { %4231 = vmatmul.mubr.f32.vlgmr.msra.gmra.mrb[16].mxu0 %v3891_v14 }
 0x321   :  { %5459 = vmatpush1.bf16.msra.mxu0 %v7194_v25  ;;  %4305 = vmatprep.mubr.f32.mxu0 %v5557_v0 }
 0x328   :  { %4307 = vmatmul.mubr.f32.vlgmr.msra.gmra.mrb[16].mxu0 %v3891_v14 }
 0x397   :  { %v3810_v59 = vpop.f32.mrb[16].mxu1 }
 0x398   :  { %v3812_v54 = vpop.f32.mrb[17].mxu1 }
 0x3fb   :  { %v4308_v1 = vpop.f32.mrb[16].mxu0 }
 0x3fc   :  { %v4313_v27 = vmul.f32 %v4308_v1, %v3810_v59  ;;  %v4310_v56 = vpop.f32.mrb[17].mxu0 }
 0x3fd   :  { %v4314_v51 = vmul.f32 %v4310_v56, %v3812_v54 }
 0x3ff   :  { %v4331_v15 = vcombine.low %v4313_v27, %v4314_v51 }
 0x401   :  { %v4338_v4 = vrot.slane %v4331_v15, %v4337_v45 }
 0x403   :  { %v4339_v8 = vcombine.high %v4338_v4, %v4338_v4  ;;  %v4346_v49 = vrot.slane %v4338_v4, %v4337_v45 }
 0x405   :  { %v4353_v25 = vrot.slane %v4339_v8, %v4337_v45  ;;  %v4357_v0 = vrot.slane %v4346_v49, %v7159_v16  ;;  %v4361_v52 = vrot.slane %v4346_v49, %v7166_v62 }
 0x407   :  { %v4365_v22 = vrot.slane %v4353_v25, %v7159_v16  ;;  %v4369_v23 = vrot.slane %v4353_v25, %v7166_v62  ;;  %v4374_v13 = vmul.f32 %v4357_v0, %v4321_v11  ;;  %v4375_v50 = vmul.f32 %v4361_v52, %v4321_v11 }
 0x409   :  { %v4376_v37 = vmul.f32 %v4365_v22, %v4328_v28  ;;  %v4377_v9 = vmul.f32 %v4369_v23, %v4328_v28  ;;  %v4382_v38 = vcombine.low %v4374_v13, %v4375_v50 }
 0x40b   :  { %v4383_v61 = vcombine.low %v4376_v37, %v4377_v9  ;;  %4386 = vst [vmem:[#allocation2] sm:$0xff] %v4382_v38 }
 0x40d   :  { %4387 = vst [vmem:[#allocation2 + $0x8] sm:$0xff] %v4383_v61 }
 0x40e   :  { %5544 = shalt.err (!%p5541_p4)
}
 0x40f   :  { %s5545_s12 = scalar_lea.hbm %s7275_s11, 256 }
 0x410   :  { %p5546_p5 = scmp.ne.s32.totalorder %s7275_s11, %s5545_s12  ;;  %p5549_p6 = scmp.lt.u32.totalorder %s5545_s12, %s7275_s11 }
 0x412   :  { %p5551_p7 = pnand %p5549_p6, %p5546_p5 }
 0x414   :  { %5554 = shalt.err (!%p5551_p7)
}
 0x415   :  { %s5562_s16 = smov 128   ;;  %s5563_s17 = smov 8  }
 0x416   :  { %4399 = dma.vmem_to_hbm [thread:$0]  %s4394_s28, 256, %s7275_s11, [#allocation3], %s5562_s16, %s5562_s16, %s5563_s17  }
 0x417   :  { %5555 = dma.done.wait [#allocation3], 256  }
 0x418   :  { %5556 = vsyncadd [#allocation3], 4294967040 }
 0x419   :  { %4403 = vsyncpa [#allocation3], 1 }

</bundles_post_ra>
